<compile_context>
chip_gen: v6e
topology: v6e:2x2x1
jax: 0.10.0
libtpu: 0.0.40
codegen_flags: <defaults>
</compile_context>

<pallas_src>
import functools

import jax
import jax.numpy as jnp
from jax.experimental import pallas as pl
from jax.experimental.pallas import tpu as pltpu


# --------------------------------------------------------------------------------------
# Helpers
# --------------------------------------------------------------------------------------

_VMEM_LIMIT_BYTES = 48 * 1024 * 1024      # explicit scoped-VMEM limit: safe on v5e/v6e (<=128 MiB
                                          # physical) and under v7x's 64 MiB physical VMEM.
_STREAM_BUDGET_BYTES = 24 * 1024 * 1024   # budget for the double-buffered streamed block per step.


def _round_up(x, m):
    return ((x + m - 1) // m) * m


def _cdiv(a, b):
    return -(-a // b)


def _byte_aware_row_tile(num_rows, lane_elems, bytes_per_elem=4, max_rows=2048):
    """Pick the row tile from the per-step VMEM byte budget (x2 for double buffering)."""
    per_row = max(1, 2 * int(lane_elems) * int(bytes_per_elem))
    tm = _STREAM_BUDGET_BYTES // per_row
    tm = max(8, min(int(tm), int(max_rows)))
    tm = (tm // 8) * 8                       # f32 sublane multiple
    tm = min(tm, _round_up(max(int(num_rows), 1), 8))
    return int(tm)


def _core_split(num_blocks):
    """Steps per core for the 2-way 'parallel' leading grid axis (megacore on v7x)."""
    return max(1, _cdiv(int(num_blocks), 2))


# --------------------------------------------------------------------------------------
# Pallas kernel 1: classification losses (weighted softmax CE + 2-class object CE)
# --------------------------------------------------------------------------------------

def _labels_loss_kernel(logits_ref, obj_ref, tgt_ref, w_ref, out_ref,
                        ce_acc, wce_acc, obj_acc, wobj_acc,
                        *, num_rows, num_classes, ow0, ow1, row_tile, steps_per_core):
    """Grid = (2 cores, L layers, steps_per_core).  Streams logits row blocks; obj/tgt/class
    weights are VMEM-resident.  Per-row columns accumulate in VMEM scratch; the cross-sublane
    reduction and the (1,1,1,4) output write happen once per (core, layer)."""
    c = pl.program_id(0)
    i = pl.program_id(2)
    step = c * steps_per_core + i

    @pl.when(i == 0)
    def _():
        ce_acc[...] = jnp.zeros_like(ce_acc)
        wce_acc[...] = jnp.zeros_like(wce_acc)
        obj_acc[...] = jnp.zeros_like(obj_acc)
        wobj_acc[...] = jnp.zeros_like(wobj_acc)

    logits = logits_ref[0].astype(jnp.float32)                              # (TM, C1)
    tm, c1 = logits.shape
    row_start = pl.multiple_of(step * row_tile, 8)
    obj = obj_ref[0, pl.ds(row_start, row_tile), :].astype(jnp.float32)     # (TM, 2) resident slice
    tgt = tgt_ref[0, pl.ds(row_start, row_tile), :]                         # (TM, 1) int32
    w = w_ref[...].astype(jnp.float32)                                      # (1, C1)

    # Row validity: ragged last block, clamped phantom blocks of the core split, padded rows.
    row = jax.lax.broadcasted_iota(jnp.int32, (tm, 1), 0)
    valid = (step * row_tile + row) < num_rows                              # (TM, 1) bool

    # Sanitize the (possibly unspecified) ragged-tail rows BEFORE any exp/log.
    logits = jnp.where(valid, logits, 0.0)

    # --- weighted softmax CE over C1 classes (masked reductions, no f32 one-hot matrix) ---
    cls = jax.lax.broadcasted_iota(jnp.int32, (tm, c1), 1)
    onehot = cls == tgt                                                     # (TM, C1) bool
    m = jnp.max(logits, axis=-1, keepdims=True)
    lse = m + jnp.log(jnp.sum(jnp.exp(logits - m), axis=-1, keepdims=True))
    tgt_logit = jnp.sum(jnp.where(onehot, logits, 0.0), axis=-1, keepdims=True)
    w_per = jnp.where(valid, jnp.sum(jnp.where(onehot, w, 0.0), axis=-1, keepdims=True), 0.0)
    ce_loss = w_per * (lse - tgt_logit)                                     # (TM, 1)

    # --- 2-class object CE in closed form (avoids a lane-sparse second CE pass) ---
    x0 = obj[:, 0:1]
    x1 = obj[:, 1:2]
    is_noobj = tgt == num_classes
    x_t = jnp.where(is_noobj, x1, x0)
    x_o = jnp.where(is_noobj, x0, x1)
    z = x_o - x_t
    softplus = jnp.maximum(z, 0.0) + jnp.log1p(jnp.exp(-jnp.abs(z)))        # lse2 - x_t
    obj_w = jnp.where(valid, jnp.where(is_noobj, ow1, ow0), 0.0)
    obj_loss = obj_w * softplus                                             # (TM, 1)

    # Deferred reduction: cheap per-row column adds each step.
    ce_acc[...] += ce_loss
    wce_acc[...] += w_per
    obj_acc[...] += obj_loss
    wobj_acc[...] += obj_w

    @pl.when(i == steps_per_core - 1)
    def _():
        sums = jnp.concatenate(
            [jnp.sum(ce_acc[...], axis=0, keepdims=True),
             jnp.sum(wce_acc[...], axis=0, keepdims=True),
             jnp.sum(obj_acc[...], axis=0, keepdims=True),
             jnp.sum(wobj_acc[...], axis=0, keepdims=True)], axis=1)        # (1, 4)
        out_ref[...] = sums.reshape(1, 1, 1, 4)


def labels_losses(logits, object_logits, target_classes, class_weight, ow0, ow1,
                  num_classes, row_tile=None):
    """Batched over decoder layers.
    logits (L, B, Q, C1); object_logits (L, B, Q, 2); target_classes (L, B, Q) int;
    class_weight (C1,); ow0/ow1 static floats.
    Returns (loss_ce, loss_object_ce), each shape (L,) float32."""
    L, B, Q, C1 = logits.shape
    R = B * Q
    logits2 = logits.reshape(L, R, C1)                 # streamed; native dtype, cast in-kernel
    obj2 = object_logits.reshape(L, R, 2)
    tgt2 = target_classes.reshape(L, R, 1).astype(jnp.int32)

    if row_tile is None:
        tm = _byte_aware_row_tile(R, C1, jnp.dtype(logits.dtype).itemsize)
    else:
        tm = max(8, _round_up(int(row_tile), 8))
        tm = min(tm, _round_up(R, 8))
    nblocks = _cdiv(R, tm)
    spc = _core_split(nblocks)          # steps per core (2-way parallel split)
    r_cov = 2 * spc * tm                # rows addressable by in-kernel pl.ds slices
    last_block = nblocks - 1

    # Tiny side inputs: VMEM-resident, zero-padded so all in-kernel slices stay in-bounds.
    obj_res = jnp.pad(obj2, ((0, 0), (0, r_cov - R), (0, 0)))
    tgt_res = jnp.pad(tgt2, ((0, 0), (0, r_cov - R), (0, 0)))
    w_res = class_weight.astype(jnp.float32).reshape(1, C1)

    kernel = functools.partial(
        _labels_loss_kernel, num_rows=R, num_classes=num_classes,
        ow0=float(ow0), ow1=float(ow1), row_tile=tm, steps_per_core=spc)

    sums = pl.pallas_call(
        kernel,
        out_shape=jax.ShapeDtypeStruct((2, L, 1, 4), jnp.float32),
        grid_spec=pltpu.PrefetchScalarGridSpec(
            num_scalar_prefetch=0,
            grid=(2, L, spc),
            in_specs=[
                # Streamed logits row blocks; clamp keeps phantom steps of the core split in-bounds.
                pl.BlockSpec((1, tm, C1),
                             lambda c, l, i: (l, jnp.minimum(c * spc + i, last_block), 0)),
                # Resident per-layer side inputs (re-fetched only when the layer changes).
                pl.BlockSpec((1, r_cov, 2), lambda c, l, i: (l, 0, 0)),
                pl.BlockSpec((1, r_cov, 1), lambda c, l, i: (l, 0, 0)),
                pl.BlockSpec((1, C1), lambda c, l, i: (0, 0)),
            ],
            out_specs=pl.BlockSpec((1, 1, 1, 4), lambda c, l, i: (c, l, 0, 0)),
            scratch_shapes=[pltpu.VMEM((tm, 1), jnp.float32)] * 4,
        ),
        compiler_params=pltpu.CompilerParams(
            dimension_semantics=("parallel", "arbitrary", "arbitrary"),
            vmem_limit_bytes=_VMEM_LIMIT_BYTES),
    )(logits2, obj_res, tgt_res, w_res)

    sums = jnp.sum(sums[:, :, 0, :], axis=0)           # (L, 4): sum the two per-core rows
    eps = jnp.float32(1e-12)   # guard against an all-zero weight sum (PyTorch would NaN here)
    loss_ce = sums[:, 0] / jnp.maximum(sums[:, 1], eps)
    loss_object_ce = sums[:, 2] / jnp.maximum(sums[:, 3], eps)
    return loss_ce, loss_object_ce


# --------------------------------------------------------------------------------------
# Pallas kernel 2: fused point_sample (bilinear gather) + sigmoid-BCE + dice partial sums
# --------------------------------------------------------------------------------------

def _fused_point_loss_kernel(src_ref, tgt_ref, idx_ref, wts_ref, out_ref, acc_ref,
                             *, num_rows, steps_per_core):
    """Grid = (2 cores, steps_per_core); one mask instance per step.
    Builds a sparse one-hot sampling matrix S[hw, p] = sum_t w_t[p] * (hw == idx_t[p]) and
    reduces it against the mask columns, so point_logits / point_labels never touch HBM."""
    c = pl.program_id(0)
    i = pl.program_id(1)
    step = c * steps_per_core + i

    @pl.when(i == 0)
    def _():
        acc_ref[...] = jnp.zeros_like(acc_ref)

    src = src_ref[0].astype(jnp.float32)        # (HW, 1) mask logits
    tgt = tgt_ref[0].astype(jnp.float32)        # (HW, 1) 0/1 target mask
    idx = idx_ref[0]                            # (4, P) int32 flat tap indices (clipped in-bounds)
    wts = wts_ref[0].astype(jnp.float32)        # (4, P) bilinear tap weights (0 for OOB taps)
    hw = src.shape[0]
    p = idx.shape[1]

    hw_iota = jax.lax.broadcasted_iota(jnp.int32, (hw, p), 0)
    s = jnp.zeros((hw, p), jnp.float32)
    for t in range(4):                                            # static 4-tap loop
        s = s + jnp.where(hw_iota == idx[t:t + 1, :], wts[t:t + 1, :], 0.0)

    # Exact f32 VPU reduction (the same S is reused for logits and labels).
    # TODO(synk): at production HW*P, tile P/HW and/or switch to an MXU one-hot matmul.
    x = jnp.sum(s * src, axis=0, keepdims=True)                   # (1, P) point logits
    y = jnp.sum(s * tgt, axis=0, keepdims=True)                   # (1, P) point labels

    # Shared exp(-|x|) feeds both the BCE log1p and the sigmoid.
    e = jnp.exp(-jnp.abs(x))
    bce = jnp.maximum(x, 0.0) - x * y + jnp.log1p(e)
    bce_mean = jnp.mean(bce, axis=-1, keepdims=True)              # (1, 1)

    inv = 1.0 / (1.0 + e)                                         # exact divide (bit-close dice)
    prob = jnp.where(x >= 0.0, inv, e * inv)                      # sigmoid(x)
    numer = 2.0 * jnp.sum(prob * y, axis=-1, keepdims=True)
    denom = jnp.sum(prob, axis=-1, keepdims=True) + jnp.sum(y, axis=-1, keepdims=True)
    dice = 1.0 - (numer + 1.0) / (denom + 1.0)                    # (1, 1)

    valid = jnp.where(step < num_rows, 1.0, 0.0)                  # phantom clamped steps -> 0
    acc_ref[...] += valid * jnp.concatenate([bce_mean, dice], axis=1)

    @pl.when(i == steps_per_core - 1)
    def _():
        out_ref[...] = acc_ref[...].reshape(1, 1, 2)


def mask_point_losses_fused(src_masks_flat, tgt_masks_flat, point_coords, H, W, num_masks,
                            mask_dtype=None):
    """src_masks_flat / tgt_masks_flat: (N, H*W); point_coords: (N, P, 2) in [0,1], (x, y).
    Fused detectron2 point_sample (bilinear, align_corners=False, zero padding) + sigmoid-CE
    + dice losses (Mask2Former definitions).  Returns (loss_mask, loss_dice) scalars."""
    N, HW = src_masks_flat.shape
    P = point_coords.shape[1]   # keep num_points a multiple of 128 where configurable

    # 4-tap bilinear index/weight prep: tiny (N, 4, P) arrays; the heavy gather runs in-kernel.
    x = point_coords[..., 0] * W - 0.5
    y = point_coords[..., 1] * H - 0.5
    x0 = jnp.floor(x)
    y0 = jnp.floor(y)
    wx1 = x - x0
    wx0 = 1.0 - wx1
    wy1 = y - y0
    wy0 = 1.0 - wy1

    def tap(ix, iy, wgt):
        inb = (ix >= 0) & (ix < W) & (iy >= 0) & (iy < H)
        flat = (jnp.clip(iy, 0, H - 1).astype(jnp.int32) * W
                + jnp.clip(ix, 0, W - 1).astype(jnp.int32))
        return flat, jnp.where(inb, wgt, 0.0)

    i00, w00 = tap(x0, y0, wx0 * wy0)
    i10, w10 = tap(x0 + 1, y0, wx1 * wy0)
    i01, w01 = tap(x0, y0 + 1, wx0 * wy1)
    i11, w11 = tap(x0 + 1, y0 + 1, wx1 * wy1)
    idx = jnp.stack([i00, i10, i01, i11], axis=1).astype(jnp.int32)        # (N, 4, P)
    wts = jnp.stack([w00, w10, w01, w11], axis=1).astype(jnp.float32)      # (N, 4, P)

    if mask_dtype is not None:   # e.g. jnp.bfloat16 halves the streamed HBM bytes (v5e gain)
        src_masks_flat = src_masks_flat.astype(mask_dtype)
        tgt_masks_flat = tgt_masks_flat.astype(mask_dtype)
    src3 = src_masks_flat.reshape(N, HW, 1)
    tgt3 = tgt_masks_flat.reshape(N, HW, 1)

    spc = _core_split(N)
    last_row = N - 1

    kernel = functools.partial(_fused_point_loss_kernel, num_rows=N, steps_per_core=spc)
    sums = pl.pallas_call(
        kernel,
        out_shape=jax.ShapeDtypeStruct((2, 1, 2), jnp.float32),
        grid_spec=pltpu.PrefetchScalarGridSpec(
            num_scalar_prefetch=0,
            grid=(2, spc),
            in_specs=[
                pl.BlockSpec((1, HW, 1), lambda c, i: (jnp.minimum(c * spc + i, last_row), 0, 0)),
                pl.BlockSpec((1, HW, 1), lambda c, i: (jnp.minimum(c * spc + i, last_row), 0, 0)),
                pl.BlockSpec((1, 4, P), lambda c, i: (jnp.minimum(c * spc + i, last_row), 0, 0)),
                pl.BlockSpec((1, 4, P), lambda c, i: (jnp.minimum(c * spc + i, last_row), 0, 0)),
            ],
            out_specs=pl.BlockSpec((1, 1, 2), lambda c, i: (c, 0, 0)),
            scratch_shapes=[pltpu.VMEM((1, 2), jnp.float32)],
        ),
        compiler_params=pltpu.CompilerParams(
            dimension_semantics=("parallel", "arbitrary"),
            vmem_limit_bytes=_VMEM_LIMIT_BYTES),
    )(src3, tgt3, idx, wts)

    inv_nm = 1.0 / float(num_masks)      # num_masks is a static python float (clamped to >= 1)
    total = jnp.sum(sums[:, 0, :], axis=0)   # (2,)
    return total[0] * inv_nm, total[1] * inv_nm


# --------------------------------------------------------------------------------------
# Plain-JAX glue (matching, uncertainty-based point selection).
# --------------------------------------------------------------------------------------

def point_sample(inp, coords):
    """detectron2 point_sample (grid_sample bilinear, align_corners=False, zero padding).
    Used only for the torch.no_grad coordinate-selection phase and the reference check.
    inp: (N, C, H, W); coords: (N, P, 2) in [0,1], last dim = (x, y)."""
    # TODO(synk): the oversampled uncertainty gather could also go through the fused Pallas path.
    N, C, H, W = inp.shape
    x = coords[..., 0] * W - 0.5
    y = coords[..., 1] * H - 0.5
    x0 = jnp.floor(x)
    y0 = jnp.floor(y)
    wx1 = x - x0
    wx0 = 1.0 - wx1
    wy1 = y - y0
    wy0 = 1.0 - wy1

    inp_flat = inp.reshape(N, C, H * W)

    def gather(ix, iy):
        valid = ((ix >= 0) & (ix < W) & (iy >= 0) & (iy < H)).astype(inp.dtype)
        ixc = jnp.clip(ix, 0, W - 1).astype(jnp.int32)
        iyc = jnp.clip(iy, 0, H - 1).astype(jnp.int32)
        flat_idx = iyc * W + ixc
        vals = jnp.take_along_axis(inp_flat, flat_idx[:, None, :], axis=2)
        return vals * valid[:, None, :]

    v00 = gather(x0, y0)
    v01 = gather(x0 + 1, y0)
    v10 = gather(x0, y0 + 1)
    v11 = gather(x0 + 1, y0 + 1)
    return (v00 * (wx0 * wy0)[:, None, :]
            + v01 * (wx1 * wy0)[:, None, :]
            + v10 * (wx0 * wy1)[:, None, :]
            + v11 * (wx1 * wy1)[:, None, :])


def calculate_uncertainty(logits):
    return -jnp.abs(logits)


def get_uncertain_point_coords_with_randomness(key, coarse_logits, num_points,
                                               oversample_ratio, importance_sample_ratio):
    num_boxes = coarse_logits.shape[0]
    num_sampled = int(num_points * oversample_ratio)
    k1, k2 = jax.random.split(key)
    point_coords = jax.random.uniform(k1, (num_boxes, num_sampled, 2), dtype=jnp.float32)
    point_logits = point_sample(coarse_logits, point_coords)
    point_uncertainties = calculate_uncertainty(point_logits)
    num_uncertain_points = int(importance_sample_ratio * num_points)
    num_random_points = num_points - num_uncertain_points
    _, idx = jax.lax.top_k(point_uncertainties[:, 0, :], num_uncertain_points)
    picked = jnp.take_along_axis(point_coords, idx[:, :, None], axis=1)
    if num_random_points > 0:
        rand = jax.random.uniform(k2, (num_boxes, num_random_points, 2), dtype=jnp.float32)
        picked = jnp.concatenate([picked, rand], axis=1)
    return picked


def simple_matcher(outputs, targets):
    # TODO(synk): the real Hungarian matcher is an external (SciPy) module; use deterministic
    # identity matching (query i <-> target i) for this synthetic kernel.
    return [(jnp.arange(t['labels'].shape[0], dtype=jnp.int32),
             jnp.arange(t['labels'].shape[0], dtype=jnp.int32)) for t in targets]


# --------------------------------------------------------------------------------------
# Criterion
# --------------------------------------------------------------------------------------

class Criterion:
    def __init__(self, num_classes, matcher, weight_dict, eos_coef, losses,
                 num_points, oversample_ratio, importance_sample_ratio,
                 ce_row_tile=None, mask_input_dtype=None):
        self.num_classes = num_classes
        self.matcher = matcher
        self.weight_dict = weight_dict
        self.eos_coef = eos_coef
        self.losses = losses
        self.num_points = num_points
        self.oversample_ratio = oversample_ratio
        self.importance_sample_ratio = importance_sample_ratio
        self.ce_row_tile = ce_row_tile            # None -> VMEM-byte-aware auto tile
        self.mask_input_dtype = mask_input_dtype  # e.g. jnp.bfloat16 to halve mask HBM traffic
        # NOTE: the reference hard-sets empty_weight[-1] = 0 regardless of eos_coef (eos_coef is
        # stored but unused there) — reproduced exactly.
        self.empty_weight = jnp.ones(num_classes + 1, dtype=jnp.float32).at[-1].set(0.0)
        self.empty_object_weight = jnp.array([1.0, 0.4], dtype=jnp.float32)
        # Object-class weights are constant buffers -> baked as static scalars (no DMA at all).
        self._object_w = (1.0, 0.4)

    # ---- permutation helpers ----
    def _get_src_permutation_idx(self, indices):
        batch_idx = jnp.concatenate(
            [jnp.full_like(src, i) for i, (src, _) in enumerate(indices)])
        src_idx = jnp.concatenate([src for src, _ in indices])
        return batch_idx, src_idx

    def _build_target_classes(self, outputs, targets, indices):
        B, Q = outputs['pred_logits'].shape[:2]
        batch_idx, src_idx = self._get_src_permutation_idx(indices)
        target_classes_o = jnp.concatenate(
            [t['labels'][J] for t, (_, J) in zip(targets, indices)]).astype(jnp.int32)
        target_classes = jnp.full((B, Q), self.num_classes, dtype=jnp.int32)
        return target_classes.at[batch_idx, src_idx].set(target_classes_o)

    # ---- losses ----
    def loss_labels(self, outputs, targets, indices, num_masks, key):
        # Single-layer path (kept for get_loss API parity); forward() uses the batched path.
        # NOTE: the reference computes a BCE-based loss_ce that is immediately overwritten by
        # the weighted cross-entropy (dead code) — skipped here.
        target_classes = self._build_target_classes(outputs, targets, indices)
        ce, oce = labels_losses(
            outputs['pred_logits'][None], outputs['pred_object_logits'][None],
            target_classes[None], self.empty_weight,
            self._object_w[0], self._object_w[1], self.num_classes, row_tile=self.ce_row_tile)
        return {'loss_ce': ce[0], 'loss_object_ce': oce[0]}

    def loss_masks(self, outputs, targets, indices, num_masks, key):
        batch_idx, src_idx = self._get_src_permutation_idx(indices)
        # TODO(synk): the advanced-index gather of pred_masks stays in plain JAX (small N).
        src_masks = outputs['pred_masks'][batch_idx, src_idx]                # (Nm, T, H, W)
        target_masks = jnp.concatenate(
            [t['masks'][i] for t, (_, i) in zip(targets, indices)]).astype(src_masks.dtype)

        # flatten(0, 1)[:, None]  ->  (Nm*T, 1, H, W)
        src_masks = src_masks.reshape((-1,) + src_masks.shape[2:])[:, None]
        target_masks = target_masks.reshape((-1,) + target_masks.shape[2:])[:, None]

        # Uncertainty-based point selection (reference runs this under torch.no_grad).
        point_coords = get_uncertain_point_coords_with_randomness(
            key, src_masks, self.num_points, self.oversample_ratio,
            self.importance_sample_ratio)                                    # (Nm*T, P, 2)

        N, _, H, W = src_masks.shape
        loss_mask, loss_dice = mask_point_losses_fused(
            src_masks.reshape(N, H * W), target_masks.reshape(N, H * W),
            point_coords, H, W, num_masks, mask_dtype=self.mask_input_dtype)
        return {'loss_mask': loss_mask, 'loss_dice': loss_dice}

    def get_loss(self, loss, outputs, targets, indices, num_masks, key):
        loss_map = {'labels': self.loss_labels, 'masks': self.loss_masks}
        assert loss in loss_map, f'do you really want to compute {loss} loss?'
        return loss_map[loss](outputs, targets, indices, num_masks, key)

    def forward(self, outputs, targets, key):
        outputs_without_aux = {k: v for k, v in outputs.items() if k != 'aux_outputs'}
        indices = self.matcher(outputs_without_aux, targets)
        num_masks = sum(int(t['labels'].shape[0]) for t in targets)
        num_masks = max(float(num_masks), 1.0)   # world_size == 1, no dist all-reduce

        # Main output + aux decoder layers (each with its own matching).
        layers = [(outputs, indices, '')]
        for li, aux in enumerate(outputs.get('aux_outputs', [])):
            layers.append((aux, self.matcher(aux, targets), f'_{li}'))

        losses = {}

        if 'labels' in self.losses:
            # One batched pallas_call over all decoder layers (amortizes launch + pipeline ramp).
            logits_l, obj_l, tgtc_l = [], [], []
            for out_i, ind_i, _ in layers:
                logits_l.append(out_i['pred_logits'])
                obj_l.append(out_i['pred_object_logits'])
                tgtc_l.append(self._build_target_classes(out_i, targets, ind_i))
            ce, oce = labels_losses(
                jnp.stack(logits_l), jnp.stack(obj_l), jnp.stack(tgtc_l),
                self.empty_weight, self._object_w[0], self._object_w[1],
                self.num_classes, row_tile=self.ce_row_tile)
            for li, (_, _, suf) in enumerate(layers):
                losses['loss_ce' + suf] = ce[li]
                losses['loss_object_ce' + suf] = oce[li]

        if 'masks' in self.losses:
            # TODO(synk): mask losses could also batch layers when per-layer matchings allow it.
            for out_i, ind_i, suf in layers:
                key, sub = jax.random.split(key)
                d = self.loss_masks(out_i, targets, ind_i, num_masks, sub)
                losses.update({k + suf: v for k, v in d.items()})

        for loss in self.losses:
            if loss in ('labels', 'masks'):
                continue
            for out_i, ind_i, suf in layers:
                key, sub = jax.random.split(key)
                d = self.get_loss(loss, out_i, targets, ind_i, num_masks, sub)
                losses.update({k + suf: v for k, v in d.items()})
        return losses


# --------------------------------------------------------------------------------------
# Pure-JAX references (for the in-script correctness checks)
# --------------------------------------------------------------------------------------

def _ref_mask_point_losses(src_flat, tgt_flat, coords, H, W, num_masks):
    N = src_flat.shape[0]
    x = point_sample(src_flat.reshape(N, 1, H, W), coords)[:, 0].astype(jnp.float32)
    y = point_sample(tgt_flat.reshape(N, 1, H, W), coords)[:, 0].astype(jnp.float32)
    bce = jnp.maximum(x, 0.0) - x * y + jnp.log1p(jnp.exp(-jnp.abs(x)))
    loss_mask = bce.mean(-1).sum() / num_masks
    prob = jax.nn.sigmoid(x)
    numer = 2.0 * (prob * y).sum(-1)
    denom = prob.sum(-1) + y.sum(-1)
    loss_dice = (1.0 - (numer + 1.0) / (denom + 1.0)).sum() / num_masks
    return loss_mask, loss_dice


def _ref_labels_losses(logits, obj, tgtc, weight, obj_weight, num_classes):
    logits = logits.astype(jnp.float32)
    logp = jax.nn.log_softmax(logits, axis=-1)
    nll = -jnp.take_along_axis(logp, tgtc[..., None], axis=-1)[..., 0]
    w_per = weight[tgtc]
    loss_ce = (w_per * nll).sum((-1, -2)) / jnp.maximum(w_per.sum((-1, -2)), 1e-12)
    t_obj = (tgtc == num_classes).astype(jnp.int32)
    logp2 = jax.nn.log_softmax(obj.astype(jnp.float32), axis=-1)
    nll2 = -jnp.take_along_axis(logp2, t_obj[..., None], axis=-1)[..., 0]
    w2 = jnp.where(t_obj == 1, obj_weight[1], obj_weight[0])
    loss_oce = (w2 * nll2).sum((-1, -2)) / jnp.maximum(w2.sum((-1, -2)), 1e-12)
    return loss_ce, loss_oce


def _close(a, b, rtol=1e-3, atol=1e-5):
    a = float(a)
    b = float(b)
    return abs(a - b) <= atol + rtol * abs(b)


# --------------------------------------------------------------------------------------
# Example run
# --------------------------------------------------------------------------------------

if __name__ == "__main__":
    B, Q, num_classes, T, H, W = 2, 8, 4, 2, 16, 16
    key = jax.random.PRNGKey(0)
    k1, k2, k3, k4, k5, k6, k7, k8 = jax.random.split(key, 8)

    outputs = {
        'pred_logits': jax.random.normal(k1, (B, Q, num_classes + 1), dtype=jnp.float32),
        'pred_object_logits': jax.random.normal(k2, (B, Q, 2), dtype=jnp.float32),
        'pred_masks': jax.random.normal(k3, (B, Q, T, H, W), dtype=jnp.float32),
        'aux_outputs': [{
            'pred_logits': jax.random.normal(k6, (B, Q, num_classes + 1), dtype=jnp.float32),
            'pred_object_logits': jax.random.normal(k7, (B, Q, 2), dtype=jnp.float32),
            'pred_masks': jax.random.normal(k8, (B, Q, T, H, W), dtype=jnp.float32),
        }],
    }
    targets = [
        {'labels': jnp.array([0, 2, 1], dtype=jnp.int32),
         'masks': (jax.random.uniform(k4, (3, T, H, W)) > 0.5).astype(jnp.float32)},
        {'labels': jnp.array([3, 1], dtype=jnp.int32),
         'masks': (jax.random.uniform(k5, (2, T, H, W)) > 0.5).astype(jnp.float32)},
    ]

    criterion = Criterion(
        num_classes=num_classes,
        matcher=simple_matcher,
        weight_dict={'loss_ce': 2.0, 'loss_object_ce': 2.0, 'loss_mask': 5.0, 'loss_dice': 5.0},
        eos_coef=0.1,
        losses=['labels', 'masks'],
        num_points=16,            # keep a multiple of 128 at production scale
        oversample_ratio=3,
        importance_sample_ratio=0.75,
        ce_row_tile=8,            # small tile so the toy shapes exercise the multi-step grid
    )

    # --- correctness check 1: fused point-sample + mask losses vs pure-JAX reference ---
    ck = jax.random.PRNGKey(123)
    ka, kb, kc = jax.random.split(ck, 3)
    Nc, Hc, Wc, Pc = 6, 16, 16, 32
    src_chk = jax.random.normal(ka, (Nc, Hc * Wc), dtype=jnp.float32)
    tgt_chk = (jax.random.uniform(kb, (Nc, Hc * Wc)) > 0.5).astype(jnp.float32)
    coords_chk = jax.random.uniform(kc, (Nc, Pc, 2), dtype=jnp.float32)
    lm_k, ld_k = mask_point_losses_fused(src_chk, tgt_chk, coords_chk, Hc, Wc, 3.0)
    lm_r, ld_r = _ref_mask_point_losses(src_chk, tgt_chk, coords_chk, Hc, Wc, 3.0)
    jax.block_until_ready((lm_k, ld_k))
    assert _close(lm_k, lm_r), (float(lm_k), float(lm_r))
    assert _close(ld_k, ld_r), (float(ld_k), float(ld_r))

    # --- full forward pass ---
    losses = criterion.forward(outputs, targets, jax.random.PRNGKey(42))
    jax.block_until_ready(losses)
    expected_keys = {'loss_ce', 'loss_object_ce', 'loss_mask', 'loss_dice',
                     'loss_ce_0', 'loss_object_ce_0', 'loss_mask_0', 'loss_dice_0'}
    assert set(losses.keys()) == expected_keys
    assert all(bool(jnp.isfinite(v)) for v in losses.values())

    # --- correctness check 2: batched label losses vs pure-JAX reference (main + aux layer) ---
    for layer_out, suf in [(outputs, ''), (outputs['aux_outputs'][0], '_0')]:
        ind = simple_matcher(layer_out, targets)
        tgtc = criterion._build_target_classes(layer_out, targets, ind)
        ce_r, oce_r = _ref_labels_losses(
            layer_out['pred_logits'][None], layer_out['pred_object_logits'][None], tgtc[None],
            criterion.empty_weight, criterion.empty_object_weight, num_classes)
        assert _close(losses['loss_ce' + suf], ce_r[0]), (float(losses['loss_ce' + suf]), float(ce_r[0]))
        assert _close(losses['loss_object_ce' + suf], oce_r[0]), (
            float(losses['loss_object_ce' + suf]), float(oce_r[0]))

    print("KERNEL_OK")
</pallas_src>

<mosaic_0001>
module attributes {stable_mosaic.version = 11 : i64} {
  func.func @_fused_point_loss_kernel(%arg0: i32, %arg1: i32, %arg2: memref<1x256x1xf32, #tpu.memory_space<vmem>>, %arg3: memref<1x256x1xf32, #tpu.memory_space<vmem>>, %arg4: memref<1x4x32xi32, #tpu.memory_space<vmem>>, %arg5: memref<1x4x32xf32, #tpu.memory_space<vmem>>, %arg6: memref<1x1x2xf32, #tpu.memory_space<vmem>>, %arg7: memref<1x2xf32, #tpu.memory_space<vmem>>) attributes {dimension_semantics = [#tpu.dimension_semantics<parallel>, #tpu.dimension_semantics<arbitrary>], iteration_bounds = array<i64: 2, 3>, scalar_prefetch = 0 : i64, scratch_operands = 1 : i64, tpu.core_type = #tpu.core_type<tc>, window_params = [{transform_indices = @transform_0, window_bounds = array<i64: 1, 256, 1>}, {transform_indices = @transform_1, window_bounds = array<i64: 1, 256, 1>}, {transform_indices = @transform_2, window_bounds = array<i64: 1, 4, 32>}, {transform_indices = @transform_3, window_bounds = array<i64: 1, 4, 32>}, {transform_indices = @transform_4, window_bounds = array<i64: 1, 1, 2>}]} {
    %c3_i32 = arith.constant 3 : i32
    %0 = arith.muli %arg0, %c3_i32 : i32
    %1 = arith.addi %0, %arg1 : i32
    %c0_i32 = arith.constant 0 : i32
    %2 = arith.cmpi eq, %arg1, %c0_i32 : i32
    %3 = arith.extui %2 : i1 to i32
    %c0_i32_0 = arith.constant 0 : i32
    %4 = arith.cmpi ne, %3, %c0_i32_0 : i32
    scf.if %4 {
      %cst_39 = arith.constant 0.000000e+00 : f32
      %109 = vector.broadcast %cst_39 : f32 to vector<1x2xf32>
      %c0_40 = arith.constant 0 : index
      %c0_41 = arith.constant 0 : index
      %110 = vector.load %arg7[%c0_40, %c0_41] : memref<1x2xf32, #tpu.memory_space<vmem>>, vector<1x2xf32>
      tpu.vector_store %arg7[%c0_40, %c0_41], %109 {strides = array<i32>} : memref<1x2xf32, #tpu.memory_space<vmem>>, vector<1x2xf32>,
    } else {
    }
    %c0 = arith.constant 0 : index
    %c0_1 = arith.constant 0 : index
    %c0_2 = arith.constant 0 : index
    %5 = vector.load %arg2[%c0, %c0_1, %c0_2] : memref<1x256x1xf32, #tpu.memory_space<vmem>>, vector<1x256x1xf32>
    %6 = vector.shape_cast %5 : vector<1x256x1xf32> to vector<256x1xf32>
    %c0_3 = arith.constant 0 : index
    %c0_4 = arith.constant 0 : index
    %c0_5 = arith.constant 0 : index
    %7 = vector.load %arg3[%c0_3, %c0_4, %c0_5] : memref<1x256x1xf32, #tpu.memory_space<vmem>>, vector<1x256x1xf32>
    %8 = vector.shape_cast %7 : vector<1x256x1xf32> to vector<256x1xf32>
    %c0_6 = arith.constant 0 : index
    %c0_7 = arith.constant 0 : index
    %c0_8 = arith.constant 0 : index
    %9 = vector.load %arg4[%c0_6, %c0_7, %c0_8] : memref<1x4x32xi32, #tpu.memory_space<vmem>>, vector<1x4x32xi32>
    %10 = vector.shape_cast %9 : vector<1x4x32xi32> to vector<4x32xi32>
    %c0_9 = arith.constant 0 : index
    %c0_10 = arith.constant 0 : index
    %c0_11 = arith.constant 0 : index
    %11 = vector.load %arg5[%c0_9, %c0_10, %c0_11] : memref<1x4x32xf32, #tpu.memory_space<vmem>>, vector<1x4x32xf32>
    %12 = vector.shape_cast %11 : vector<1x4x32xf32> to vector<4x32xf32>
    %13 = tpu.iota {dimensions = array<i32: 0>} : vector<256x32xi32>
    %cst = arith.constant 0.000000e+00 : f32
    %14 = vector.broadcast %cst : f32 to vector<256x32xf32>
    %15 = vector.extract_strided_slice %10 {offsets = [0, 0], sizes = [1, 32], strides = [1, 1]} : vector<4x32xi32> to vector<1x32xi32>
    %16 = vector.broadcast %15 : vector<1x32xi32> to vector<256x32xi32>
    %17 = arith.cmpi eq, %13, %16 : vector<256x32xi32>
    %18 = vector.extract_strided_slice %12 {offsets = [0, 0], sizes = [1, 32], strides = [1, 1]} : vector<4x32xf32> to vector<1x32xf32>
    %cst_12 = arith.constant 0.000000e+00 : f32
    %19 = vector.shape_cast %18 : vector<1x32xf32> to vector<1x32xf32>
    %20 = vector.broadcast %19 : vector<1x32xf32> to vector<256x32xf32>
    %21 = vector.broadcast %cst_12 : f32 to vector<256x32xf32>
    %22 = arith.select %17, %20, %21 : vector<256x32xi1>, vector<256x32xf32>
    %23 = arith.addf %14, %22 : vector<256x32xf32>
    %24 = vector.extract_strided_slice %10 {offsets = [1, 0], sizes = [1, 32], strides = [1, 1]} : vector<4x32xi32> to vector<1x32xi32>
    %25 = vector.broadcast %24 : vector<1x32xi32> to vector<256x32xi32>
    %26 = arith.cmpi eq, %13, %25 : vector<256x32xi32>
    %27 = vector.extract_strided_slice %12 {offsets = [1, 0], sizes = [1, 32], strides = [1, 1]} : vector<4x32xf32> to vector<1x32xf32>
    %cst_13 = arith.constant 0.000000e+00 : f32
    %28 = vector.shape_cast %27 : vector<1x32xf32> to vector<1x32xf32>
    %29 = vector.broadcast %28 : vector<1x32xf32> to vector<256x32xf32>
    %30 = vector.broadcast %cst_13 : f32 to vector<256x32xf32>
    %31 = arith.select %26, %29, %30 : vector<256x32xi1>, vector<256x32xf32>
    %32 = arith.addf %23, %31 : vector<256x32xf32>
    %33 = vector.extract_strided_slice %10 {offsets = [2, 0], sizes = [1, 32], strides = [1, 1]} : vector<4x32xi32> to vector<1x32xi32>
    %34 = vector.broadcast %33 : vector<1x32xi32> to vector<256x32xi32>
    %35 = arith.cmpi eq, %13, %34 : vector<256x32xi32>
    %36 = vector.extract_strided_slice %12 {offsets = [2, 0], sizes = [1, 32], strides = [1, 1]} : vector<4x32xf32> to vector<1x32xf32>
    %cst_14 = arith.constant 0.000000e+00 : f32
    %37 = vector.shape_cast %36 : vector<1x32xf32> to vector<1x32xf32>
    %38 = vector.broadcast %37 : vector<1x32xf32> to vector<256x32xf32>
    %39 = vector.broadcast %cst_14 : f32 to vector<256x32xf32>
    %40 = arith.select %35, %38, %39 : vector<256x32xi1>, vector<256x32xf32>
    %41 = arith.addf %32, %40 : vector<256x32xf32>
    %42 = vector.extract_strided_slice %10 {offsets = [3, 0], sizes = [1, 32], strides = [1, 1]} : vector<4x32xi32> to vector<1x32xi32>
    %43 = vector.broadcast %42 : vector<1x32xi32> to vector<256x32xi32>
    %44 = arith.cmpi eq, %13, %43 : vector<256x32xi32>
    %45 = vector.extract_strided_slice %12 {offsets = [3, 0], sizes = [1, 32], strides = [1, 1]} : vector<4x32xf32> to vector<1x32xf32>
    %cst_15 = arith.constant 0.000000e+00 : f32
    %46 = vector.shape_cast %45 : vector<1x32xf32> to vector<1x32xf32>
    %47 = vector.broadcast %46 : vector<1x32xf32> to vector<256x32xf32>
    %48 = vector.broadcast %cst_15 : f32 to vector<256x32xf32>
    %49 = arith.select %44, %47, %48 : vector<256x32xi1>, vector<256x32xf32>
    %50 = arith.addf %41, %49 : vector<256x32xf32>
    %51 = vector.broadcast %6 : vector<256x1xf32> to vector<256x32xf32>
    %52 = arith.mulf %50, %51 : vector<256x32xf32>
    %cst_16 = arith.constant dense<0.000000e+00> : vector<32xf32>
    %53 = vector.multi_reduction <add>, %52, %cst_16 [0] : vector<256x32xf32> to vector<32xf32>
    %54 = vector.shape_cast %53 : vector<32xf32> to vector<1x32xf32>
    %55 = vector.broadcast %8 : vector<256x1xf32> to vector<256x32xf32>
    %56 = arith.mulf %50, %55 : vector<256x32xf32>
    %cst_17 = arith.constant dense<0.000000e+00> : vector<32xf32>
    %57 = vector.multi_reduction <add>, %56, %cst_17 [0] : vector<256x32xf32> to vector<32xf32>
    %58 = vector.shape_cast %57 : vector<32xf32> to vector<1x32xf32>
    %59 = math.absf %54 : vector<1x32xf32>
    %cst_18 = arith.constant 0.000000e+00 : f32
    %60 = vector.broadcast %cst_18 : f32 to vector<1x32xf32>
    %61 = arith.subf %60, %59 : vector<1x32xf32>
    %62 = math.exp %61 : vector<1x32xf32>
    %cst_19 = arith.constant 0.000000e+00 : f32
    %63 = vector.broadcast %cst_19 : f32 to vector<1x32xf32>
    %64 = arith.maximumf %54, %63 : vector<1x32xf32>
    %65 = arith.mulf %54, %58 : vector<1x32xf32>
    %66 = arith.subf %64, %65 : vector<1x32xf32>
    %67 = math.log1p %62 : vector<1x32xf32>
    %68 = arith.addf %66, %67 : vector<1x32xf32>
    %cst_20 = arith.constant dense<0.000000e+00> : vector<1xf32>
    %69 = vector.multi_reduction <add>, %68, %cst_20 [1] : vector<1x32xf32> to vector<1xf32>
    %70 = vector.shape_cast %69 : vector<1xf32> to vector<1x1xf32>
    %cst_21 = arith.constant 3.200000e+01 : f32
    %71 = vector.broadcast %cst_21 : f32 to vector<1x1xf32>
    %72 = arith.divf %70, %71 : vector<1x1xf32>
    %cst_22 = arith.constant 1.000000e+00 : f32
    %73 = vector.broadcast %cst_22 : f32 to vector<1x32xf32>
    %74 = arith.addf %73, %62 : vector<1x32xf32>
    %cst_23 = arith.constant 1.000000e+00 : f32
    %75 = vector.broadcast %cst_23 : f32 to vector<1x32xf32>
    %76 = arith.divf %75, %74 : vector<1x32xf32>
    %cst_24 = arith.constant 0.000000e+00 : f32
    %77 = vector.broadcast %cst_24 : f32 to vector<1x32xf32>
    %78 = arith.cmpf oge, %54, %77 : vector<1x32xf32>
    %79 = arith.mulf %62, %76 : vector<1x32xf32>
    %80 = arith.select %78, %76, %79 : vector<1x32xi1>, vector<1x32xf32>
    %81 = arith.mulf %80, %58 : vector<1x32xf32>
    %cst_25 = arith.constant dense<0.000000e+00> : vector<1xf32>
    %82 = vector.multi_reduction <add>, %81, %cst_25 [1] : vector<1x32xf32> to vector<1xf32>
    %83 = vector.shape_cast %82 : vector<1xf32> to vector<1x1xf32>
    %cst_26 = arith.constant 2.000000e+00 : f32
    %84 = vector.broadcast %cst_26 : f32 to vector<1x1xf32>
    %85 = arith.mulf %84, %83 : vector<1x1xf32>
    %cst_27 = arith.constant dense<0.000000e+00> : vector<1xf32>
    %86 = vector.multi_reduction <add>, %80, %cst_27 [1] : vector<1x32xf32> to vector<1xf32>
    %87 = vector.shape_cast %86 : vector<1xf32> to vector<1x1xf32>
    %cst_28 = arith.constant dense<0.000000e+00> : vector<1xf32>
    %88 = vector.multi_reduction <add>, %58, %cst_28 [1] : vector<1x32xf32> to vector<1xf32>
    %89 = vector.shape_cast %88 : vector<1xf32> to vector<1x1xf32>
    %90 = arith.addf %87, %89 : vector<1x1xf32>
    %cst_29 = arith.constant 1.000000e+00 : f32
    %91 = vector.broadcast %cst_29 : f32 to vector<1x1xf32>
    %92 = arith.addf %85, %91 : vector<1x1xf32>
    %cst_30 = arith.constant 1.000000e+00 : f32
    %93 = vector.broadcast %cst_30 : f32 to vector<1x1xf32>
    %94 = arith.addf %90, %93 : vector<1x1xf32>
    %95 = arith.divf %92, %94 : vector<1x1xf32>
    %cst_31 = arith.constant 1.000000e+00 : f32
    %96 = vector.broadcast %cst_31 : f32 to vector<1x1xf32>
    %97 = arith.subf %96, %95 : vector<1x1xf32>
    %c6_i32 = arith.constant 6 : i32
    %98 = arith.cmpi slt, %1, %c6_i32 : i32
    %cst_32 = arith.constant 1.000000e+00 : f32
    %cst_33 = arith.constant 0.000000e+00 : f32
    %99 = arith.select %98, %cst_32, %cst_33 : f32
    %c0_34 = arith.constant 0 : index
    %c0_35 = arith.constant 0 : index
    %100 = vector.load %arg7[%c0_34, %c0_35] : memref<1x2xf32, #tpu.memory_space<vmem>>, vector<1x2xf32>
    %101 = tpu.concatenate %72, %97 in 1 : vector<1x1xf32>, vector<1x1xf32> -> vector<1x2xf32>
    %102 = vector.broadcast %99 : f32 to vector<1x2xf32>
    %103 = arith.mulf %102, %101 : vector<1x2xf32>
    %104 = arith.addf %100, %103 : vector<1x2xf32>
    %c0_36 = arith.constant 0 : index
    %c0_37 = arith.constant 0 : index
    %105 = vector.load %arg7[%c0_36, %c0_37] : memref<1x2xf32, #tpu.memory_space<vmem>>, vector<1x2xf32>
    tpu.vector_store %arg7[%c0_36, %c0_37], %104 {strides = array<i32>} : memref<1x2xf32, #tpu.memory_space<vmem>>, vector<1x2xf32>,
    %c2_i32 = arith.constant 2 : i32
    %106 = arith.cmpi eq, %arg1, %c2_i32 : i32
    %107 = arith.extui %106 : i1 to i32
    %c0_i32_38 = arith.constant 0 : i32
    %108 = arith.cmpi ne, %107, %c0_i32_38 : i32
    scf.if %108 {
      %c0_39 = arith.constant 0 : index
      %c0_40 = arith.constant 0 : index
      %109 = vector.load %arg7[%c0_39, %c0_40] : memref<1x2xf32, #tpu.memory_space<vmem>>, vector<1x2xf32>
      %110 = vector.shape_cast %109 : vector<1x2xf32> to vector<1x1x2xf32>
      %c0_41 = arith.constant 0 : index
      %c0_42 = arith.constant 0 : index
      %c0_43 = arith.constant 0 : index
      %111 = vector.load %arg6[%c0_41, %c0_42, %c0_43] : memref<1x1x2xf32, #tpu.memory_space<vmem>>, vector<1x1x2xf32>
      tpu.vector_store %arg6[%c0_41, %c0_42, %c0_43], %110 {strides = array<i32>} : memref<1x1x2xf32, #tpu.memory_space<vmem>>, vector<1x1x2xf32>,
    } else {
    }
    return
  }
  func.func @transform_0(%arg0: i32, %arg1: i32) -> (i32, i32, i32) {
    %c3_i32 = arith.constant 3 : i32
    %0 = arith.muli %arg0, %c3_i32 : i32
    %1 = arith.addi %0, %arg1 : i32
    %c5_i32 = arith.constant 5 : i32
    %2 = arith.minsi %1, %c5_i32 : i32
    %c0_i32 = arith.constant 0 : i32
    %c0_i32_0 = arith.constant 0 : i32
    %c0_i32_1 = arith.constant 0 : i32
    return %2, %c0_i32, %c0_i32_0 : i32, i32, i32
  }
  func.func @transform_1(%arg0: i32, %arg1: i32) -> (i32, i32, i32) {
    %c3_i32 = arith.constant 3 : i32
    %0 = arith.muli %arg0, %c3_i32 : i32
    %1 = arith.addi %0, %arg1 : i32
    %c5_i32 = arith.constant 5 : i32
    %2 = arith.minsi %1, %c5_i32 : i32
    %c0_i32 = arith.constant 0 : i32
    %c0_i32_0 = arith.constant 0 : i32
    %c0_i32_1 = arith.constant 0 : i32
    return %2, %c0_i32, %c0_i32_0 : i32, i32, i32
  }
  func.func @transform_2(%arg0: i32, %arg1: i32) -> (i32, i32, i32) {
    %c3_i32 = arith.constant 3 : i32
    %0 = arith.muli %arg0, %c3_i32 : i32
    %1 = arith.addi %0, %arg1 : i32
    %c5_i32 = arith.constant 5 : i32
    %2 = arith.minsi %1, %c5_i32 : i32
    %c0_i32 = arith.constant 0 : i32
    %c0_i32_0 = arith.constant 0 : i32
    %c0_i32_1 = arith.constant 0 : i32
    return %2, %c0_i32, %c0_i32_0 : i32, i32, i32
  }
  func.func @transform_3(%arg0: i32, %arg1: i32) -> (i32, i32, i32) {
    %c3_i32 = arith.constant 3 : i32
    %0 = arith.muli %arg0, %c3_i32 : i32
    %1 = arith.addi %0, %arg1 : i32
    %c5_i32 = arith.constant 5 : i32
    %2 = arith.minsi %1, %c5_i32 : i32
    %c0_i32 = arith.constant 0 : i32
    %c0_i32_0 = arith.constant 0 : i32
    %c0_i32_1 = arith.constant 0 : i32
    return %2, %c0_i32, %c0_i32_0 : i32, i32, i32
  }
  func.func @transform_4(%arg0: i32, %arg1: i32) -> (i32, i32, i32) {
    %c0_i32 = arith.constant 0 : i32
    %c0_i32_0 = arith.constant 0 : i32
    %c0_i32_1 = arith.constant 0 : i32
    return %arg0, %c0_i32, %c0_i32_0 : i32, i32, i32
  }
}

</mosaic_0001>

<bundles_post_ra>
// kernel: tpu_custom_call.1
= control target key start
LH: loop header
LB: loop body
LE: loop exit
PB: predicated region body
PF: predicated region fallthrough
CT: control target
= control target key end

     0   :  { %9 = vsyncpa [#allocation4], 0  ;;  %s2881_s0 = inlined_call_operand.vmem [shape: f32[6,256,1], index: 0, kind: input, shape index: {}]   ;;  %s2882_s1 = inlined_call_operand.vmem [shape: f32[6,256,1], index: 1, kind: input, shape index: {}]   ;;  %s2883_s2 = inlined_call_operand.vmem [shape: s32[6,4,32], index: 2, kind: input, shape index: {}]   ;;  %s2884_s3 = inlined_call_operand.vmem [shape: f32[6,4,32], index: 3, kind: input, shape index: {}]   ;;  %s2885_s4 = inlined_call_operand.hbm [shape: f32[2,1,2], index: 4, kind: output, shape index: {}]  }
   0x1   :  { %11 = vsyncpa [#allocation4 + $0x1], 0  ;;  %s1830_s15 = smov 0   ;;  %s1832_s16 = smov 0  }
   0x2   :  { %s1834_s17 = smov 0   ;;  %s1836_s18 = smov 0  }
   0x3   :  { %s1838_s19 = smov 0   ;;  %s1840_s20 = smov 0  }
   0x4   :  { %s1842_s21 = smov 0   ;;  %s1844_s22 = smov 0  }
   0x5 LB: > { %2893 = sst [smem:[#allocation6_spill]] %s1792_s20  ;;  %s1595_s23 = sadd.s32 4294967295, %s1800_s22   ;;  %s1800_s22 = sphi %s1844_s22, %s17_s22   ;;  %s1796_s21 = sphi %s1842_s21, %s2912_s21   ;;  %s1792_s20 = sphi %s1840_s20, %s2911_s20   ;;  %s1788_s19 = sphi %s1838_s19, %s2910_s19   ;;  %s1784_s18 = sphi %s1836_s18, %s2909_s18   ;;  %s1780_s17 = sphi %s1834_s17, %s2915_s17   ;;  %s1776_s16 = sphi %s1832_s16, %s2914_s16   ;;  %s1772_s15 = sphi %s1830_s15, %s2913_s15  }
   0x6   : > { %2894 = sst [smem:[#allocation7_spill]] %s1796_s21  ;;  %s1596_s24 = sadd.s32 4294967294, %s1800_s22  }
   0x7   : > { %s26_s25 = sadd.s32 1, %s1792_s20  ;;  %s29_s26 = sadd.s32 1, %s1796_s21 }
   0x8   : > { %p27_p0 = scmp.ge.s32.totalorder %s26_s25, 3  ;;  %p182_p1 = scmp.ne.s32.totalorder %s1780_s17, %s1776_s16 }
   0x9   : > { %p183_p2 = scmp.eq.s32.totalorder %s1595_s23, 5  ;;  %p188_p4 = scmp.ne.s32.totalorder %s1776_s16, %s1772_s15 }
   0xa   : > { %s2917_s25 = smov (%p27_p0, %s26_s25), 0  ;;  %s2919_s26 = smov (!%p27_p0, %s29_s26), %s1796_s21 }
   0xb   : > { %2895 = sst [smem:[#allocation8_spill]] %s2917_s25  ;;  %p1879_p3 = por %p183_p2, %p182_p1 }
   0xc   : > { %p31_p5 = scmp.ge.s32.totalorder %s2919_s26, 2  ;;  %p189_p6 = scmp.eq.s32.totalorder %s1596_s24, 5 }
   0xd   : > { %p1599_p7 = scmp.ge.s32.totalorder %s1800_s22, 1  ;;  %p269_p8 = scmp.lt.s32.totalorder %s1800_s22, 7 }
   0xe   : > { %s2921_s26 = smov (%p31_p5, %s2919_s26), 0  ;;  %p1889_p9 = por %p189_p6, %p188_p4 }
   0xf   : > { %2897 = sst [smem:[#allocation9_spill]] %s2921_s26  ;;  %p270_p10 = pnand %p1599_p7, %p269_p8 }
  0x10   : > { %s169_s29 = ssub.s32 %s1796_s21, %s2921_s26  ;;  %s172_s30 = sadd.s32 1, %s1780_s17 }
  0x11   : > { %p170_p11 = scmp.eq.s32.totalorder %s169_s29, 0  ;;  %273 = sbr.rel (%p270_p10) target bundleno = 508 (0x1fc), region = 36 }
  0x13   : > { %s1897_s5 = scalar_select %p170_p11, %s1780_s17, %s172_s30  }
  0x16   : > { %s323_s7 = smul.u32 3, %s1788_s19  ;;  %p1618_p13 = scmp.ne.s32.totalorder %s1784_s18, 0 }
  0x18   : > { %s1902_s8 = sadd.s32 %s1784_s18, %s323_s7 }
  0x19   : > { %p325_p12 = scmp.lt.s32.totalorder %s1902_s8, 5 }
  0x1b   : > { %s326_s9 = scalar_select %p325_p12, %s1902_s8, 5 }
  0x1d   : > { %s2923_s9 = smov (!%p325_p12, %s326_s9), 5 }
  0x1e   : > { %s1623_s10 = sshll.u32 %s2923_s9, 8  ;;  %s1613_s11 = sshll.u32 %s2923_s9, 2 }
  0x1f   : > { %s1909_s14 = scalar_lea.vmem %s2881_s0, %s1623_s10  ;;  %s1914_s29 = scalar_lea.vmem %s2882_s1, %s1623_s10 }
  0x20   : > { %s1919_s6 = scalar_lea.vmem %s2883_s2, %s1613_s11  ;;  %s1924_s21 = scalar_lea.vmem %s2884_s3, %s1613_s11 }
  0x21   : > { %s2899_s9 = sand.u32 1, %s1776_s16   ;;  %378 = sbr.rel (%p1618_p13) target bundleno = 40 (0x28), region = 40 }
  0x22   : > { %s1928_s20 = scalar_lea.vmem [#allocation3], %s2899_s9 }
  0x26   : > { %vm379_vm0 = vcmask 8192   ;;  %v1802_v0 = vmov 0.0  }
  0x27   : > { %380 = vst.msk [vmem:[#allocation2] sm:$0x1] %vm379_vm0, %v1802_v0 }
  0x28 PF: > { %v383_v1 = vld [vmem:[%s1909_s14 + $0x10] sm:$0xff]  ;;  %v381_v2 = vld [vmem:[%s1909_s14] sm:$0xff]  ;;  %v1803_v3 = vmov 0   ;;  %v384_v4 = vld [vmem:[%s1909_s14 + $0x18] sm:$0xff]  ;;  %v447_v36 = vlaneseq  ;;  %p1464_p0 = scmp.lt.s32.totalorder %s1902_s8, 6  ;;  %p1619_p1 = scmp.ne.s32.totalorder %s1784_s18, 2 }
  0x29   : > { %1699 = vset.pattern.permute.xlu1 %v1803_v3  ;;  %1698 = vset.pattern.permute.xlu0 %v1803_v3  ;;  %v382_v5 = vld [vmem:[%s1909_s14 + $0x8] sm:$0xff]  ;;  %v385_v7 = vld [vmem:[%s1909_s14 + $0x20] sm:$0xff]  ;;  %v388_v8 = vld [vmem:[%s1909_s14 + $0x38] sm:$0xff] }
  0x2a   : > { %908 = vperm.xlu1 %1699, %v383_v1   ;;  %898 = vperm.xlu0 %1698, %v381_v2   ;;  %v386_v6 = vld [vmem:[%s1909_s14 + $0x28] sm:$0xff]  ;;  %v387_v9 = vld [vmem:[%s1909_s14 + $0x30] sm:$0xff]  ;;  %v389_v11 = vld [vmem:[%s1909_s14 + $0x40] sm:$0xff]  ;;  %v1967_v39 = vshrl.u32 %v447_v36, 7 }
  0x2b   : > { %v390_v10 = vld [vmem:[%s1909_s14 + $0x48] sm:$0xff]  ;;  %v392_v12 = vld [vmem:[%s1909_s14 + $0x58] sm:$0xff]  ;;  %v391_v13 = vld [vmem:[%s1909_s14 + $0x50] sm:$0xff] }
  0x2c   : > { %v394_v14 = vld [vmem:[%s1909_s14 + $0x68] sm:$0xff]  ;;  %v393_v15 = vld [vmem:[%s1909_s14 + $0x60] sm:$0xff]  ;;  %v396_v16 = vld [vmem:[%s1909_s14 + $0x78] sm:$0xff]  ;;  %v482_v42 = vsub.s32 0, %v1967_v39  ;;  %v586_v43 = vsub.s32 1, %v1967_v39  ;;  %v1977_v47 = vadd.s32 16, %v1967_v39 }
  0x2d   : > { %v395_v17 = vld [vmem:[%s1909_s14 + $0x70] sm:$0xff]  ;;  %v398_v18 = vld [vmem:[%s1909_s14 + $0x88] sm:$0xff]  ;;  %v397_v19 = vld [vmem:[%s1909_s14 + $0x80] sm:$0xff]  ;;  %v690_v51 = vsub.s32 2, %v1967_v39  ;;  %v1988_v54 = vadd.s32 24, %v1967_v39  ;;  %v794_v58 = vsub.s32 3, %v1967_v39 }
  0x2e   : > { %913 = vperm.xlu1 %1699, %v384_v4   ;;  %903 = vperm.xlu0 %1698, %v382_v5   ;;  %v400_v20 = vld [vmem:[%s1909_s14 + $0x98] sm:$0xff]  ;;  %v399_v21 = vld [vmem:[%s1909_s14 + $0x90] sm:$0xff]  ;;  %v413_v22 = vld [vmem:[%s1914_s29] sm:$0xff]  ;;  %v2006_v59 = vadd.s32 8, %v1967_v39  ;;  %v2009_v60 = vadd.s32 40, %v1967_v39  ;;  %v2012_v61 = vadd.s32 32, %v1967_v39 }
  0x2f   : > { %v401_v23 = vld [vmem:[%s1909_s14 + $0xa0] sm:$0xff]  ;;  %v402_v24 = vld [vmem:[%s1909_s14 + $0xa8] sm:$0xff]  ;;  %v403_v26 = vld [vmem:[%s1909_s14 + $0xb0] sm:$0xff] }
  0x30   : > { %v414_v25 = vld [vmem:[%s1914_s29 + $0x8] sm:$0xff]  ;;  %v415_v27 = vld [vmem:[%s1914_s29 + $0x10] sm:$0xff]  ;;  %v404_v28 = vld [vmem:[%s1909_s14 + $0xb8] sm:$0xff] }
  0x31   : > { %v416_v29 = vld [vmem:[%s1914_s29 + $0x18] sm:$0xff]  ;;  %v405_v30 = vld [vmem:[%s1909_s14 + $0xc0] sm:$0xff]  ;;  %v406_v32 = vld [vmem:[%s1909_s14 + $0xc8] sm:$0xff] }
  0x32   : > { %923 = vperm.xlu1 %1699, %v386_v6   ;;  %918 = vperm.xlu0 %1698, %v385_v7   ;;  %v417_v31 = vld [vmem:[%s1914_s29 + $0x20] sm:$0xff]  ;;  %v418_v33 = vld [vmem:[%s1914_s29 + $0x28] sm:$0xff]  ;;  %v407_v34 = vld [vmem:[%s1909_s14 + $0xd0] sm:$0xff]  ;;  %v2033_v6 = vadd.s32 56, %v1967_v39  ;;  %v2036_v7 = vadd.s32 48, %v1967_v39 }
  0x33   : > { %v419_v35 = vld [vmem:[%s1914_s29 + $0x30] sm:$0xff]  ;;  %v408_v37 = vld [vmem:[%s1909_s14 + $0xd8] sm:$0xff]  ;;  %v409_v40 = vld [vmem:[%s1909_s14 + $0xe0] sm:$0xff] }
  0x34   : > { %v420_v38 = vld [vmem:[%s1914_s29 + $0x38] sm:$0xff]  ;;  %v421_v41 = vld [vmem:[%s1914_s29 + $0x40] sm:$0xff]  ;;  %v410_v45 = vld [vmem:[%s1909_s14 + $0xe8] sm:$0xff] }
  0x35   : > { %v445_v44 = vld [vmem:[%s1919_s6] sm:$0xf]  ;;  %v422_v46 = vld [vmem:[%s1914_s29 + $0x48] sm:$0xff]  ;;  %v411_v52 = vld [vmem:[%s1909_s14 + $0xf0] sm:$0xff] }
  0x36   : > { %933 = vperm.xlu1 %1699, %v388_v8   ;;  %928 = vperm.xlu0 %1698, %v387_v9   ;;  %v446_v48 = vld [vmem:[%s1924_s21] sm:$0xf]  ;;  %v1980_v49 = vrot.slane %v445_v44, %v482_v42  ;;  %v1982_v50 = vrot.slane %v445_v44, %v586_v43  ;;  %v423_v53 = vld [vmem:[%s1914_s29 + $0x50] sm:$0xff]  ;;  %v1998_v57 = vrot.slane %v445_v44, %v690_v51  ;;  %v412_v62 = vld [vmem:[%s1909_s14 + $0xf8] sm:$0xff]  ;;  %s1465_s21 = scalar_select %p1464_p0, 1.0, 0.0 }
  0x37   : > { %v1992_v55 = vrot.slane %v446_v48, %v482_v42  ;;  %v1996_v56 = vrot.slane %v446_v48, %v586_v43  ;;  %v424_v63 = vld [vmem:[%s1914_s29 + $0x58] sm:$0xff]  ;;  %v2024_v2 = vrot.slane %v446_v48, %v690_v51  ;;  %v2028_v5 = vrot.slane %v445_v44, %v794_v58  ;;  %v429_v42 = vld [vmem:[%s1914_s29 + $0x80] sm:$0xff] }
  0x38   : > { %vm486_vm1 = vcmp.eq.s32.totalorder %v1977_v47, %v1980_v49  ;;  %vm590_vm2 = vcmp.eq.s32.totalorder %v1977_v47, %v1982_v50  ;;  %vm484_vm3 = vcmp.eq.s32.totalorder %v1967_v39, %v1980_v49  ;;  %vm588_vm4 = vcmp.eq.s32.totalorder %v1967_v39, %v1982_v50 }
  0x39   : > { %v522_v0 = vsel %vm486_vm1, %v1992_v55, 0.0  ;;  %v626_v1 = vsel %vm590_vm2, %v1996_v56, 0.0  ;;  %vm487_vm5 = vcmp.eq.s32.totalorder %v1988_v54, %v1980_v49  ;;  %vm591_vm6 = vcmp.eq.s32.totalorder %v1988_v54, %v1982_v50 }
  0x3a   : > { %943 = vperm.xlu1 %1699, %v390_v10   ;;  %938 = vperm.xlu0 %1698, %v389_v11   ;;  %vm694_vm7 = vcmp.eq.s32.totalorder %v1977_v47, %v1998_v57  ;;  %v520_v3 = vsel %vm484_vm3, %v1992_v55, 0.0  ;;  %v624_v4 = vsel %vm588_vm4, %v1996_v56, 0.0  ;;  %vm692_vm8 = vcmp.eq.s32.totalorder %v1967_v39, %v1998_v57 }
  0x3b   : > { %v658_v8 = vadd.f32 %v626_v1, %v522_v0  ;;  %v523_v9 = vsel %vm487_vm5, %v1992_v55, 0.0  ;;  %v627_v10 = vsel %vm591_vm6, %v1996_v56, 0.0  ;;  %v2041_v11 = vadd.s32 72, %v1967_v39 }
  0x3c   : > { %vm695_vm9 = vcmp.eq.s32.totalorder %v1988_v54, %v1998_v57  ;;  %vm485_vm10 = vcmp.eq.s32.totalorder %v2006_v59, %v1980_v49  ;;  %vm589_vm11 = vcmp.eq.s32.totalorder %v2006_v59, %v1982_v50  ;;  %vm798_vm12 = vcmp.eq.s32.totalorder %v1977_v47, %v2028_v5 }
  0x3d   : > { %vm796_vm13 = vcmp.eq.s32.totalorder %v1967_v39, %v2028_v5  ;;  %vm799_vm14 = vcmp.eq.s32.totalorder %v1988_v54, %v2028_v5  ;;  %vm693_vm15 = vcmp.eq.s32.totalorder %v2006_v59, %v1998_v57  ;;  %vm797_vm0 = vcmp.eq.s32.totalorder %v2006_v59, %v2028_v5 }
  0x3e   : > { %953 = vperm.xlu1 %1699, %v392_v12   ;;  %948 = vperm.xlu0 %1698, %v391_v13   ;;  %v426_v12 = vld [vmem:[%s1914_s29 + $0x68] sm:$0xff]  ;;  %v425_v13 = vld [vmem:[%s1914_s29 + $0x60] sm:$0xff]  ;;  %vm489_vm1 = vcmp.eq.s32.totalorder %v2009_v60, %v1980_v49  ;;  %vm593_vm2 = vcmp.eq.s32.totalorder %v2009_v60, %v1982_v50  ;;  %vm488_vm3 = vcmp.eq.s32.totalorder %v2012_v61, %v1980_v49 }
  0x3f   : > { %vm592_vm4 = vcmp.eq.s32.totalorder %v2012_v61, %v1982_v50  ;;  %vm697_vm5 = vcmp.eq.s32.totalorder %v2009_v60, %v1998_v57  ;;  %vm491_vm6 = vcmp.eq.s32.totalorder %v2033_v6, %v1980_v49  ;;  %v525_v51 = vsel %vm489_vm1, %v1992_v55, 0.0 }
  0x40   : > { %v629_v54 = vsel %vm593_vm2, %v1996_v56, 0.0  ;;  %v628_v59 = vsel %vm592_vm4, %v1996_v56, 0.0  ;;  %vm701_vm1 = vcmp.eq.s32.totalorder %v2041_v11, %v1998_v57  ;;  %vm803_vm4 = vcmp.eq.s32.totalorder %v2033_v6, %v2028_v5 }
  0x42   : > { %963 = vperm.xlu1 %1699, %v394_v14   ;;  %958 = vperm.xlu0 %1698, %v393_v15   ;;  %v730_v14 = vsel %vm694_vm7, %v2024_v2, 0.0  ;;  %v656_v15 = vadd.f32 %v624_v4, %v520_v3  ;;  %vm595_vm7 = vcmp.eq.s32.totalorder %v2033_v6, %v1982_v50  ;;  %v661_v4 = vadd.f32 %v629_v54, %v525_v51 }
  0x46   : > { %973 = vperm.xlu1 %1699, %v396_v16   ;;  %968 = vperm.xlu0 %1698, %v395_v17   ;;  %v2052_v16 = vadd.s32 64, %v1967_v39  ;;  %v2054_v17 = vrot.slane %v446_v48, %v794_v58  ;;  %v524_v58 = vsel %vm488_vm3, %v1992_v55, 0.0 }
  0x48   : > { %v835_v36 = vsel %vm799_vm14, %v2054_v17, 0.0  ;;  %vm597_vm14 = vcmp.eq.s32.totalorder %v2041_v11, %v1982_v50  ;;  %vm492_vm2 = vcmp.eq.s32.totalorder %v2052_v16, %v1980_v49  ;;  %vm596_vm3 = vcmp.eq.s32.totalorder %v2052_v16, %v1982_v50 }
  0x4a   : > { %983 = vperm.xlu1 %1699, %v398_v18   ;;  %978 = vperm.xlu0 %1698, %v397_v19   ;;  %v728_v18 = vsel %vm692_vm8, %v2024_v2, 0.0  ;;  %v659_v19 = vadd.f32 %v627_v10, %v523_v9  ;;  %vm490_vm8 = vcmp.eq.s32.totalorder %v2036_v7, %v1980_v49  ;;  %v434_v9 = vld [vmem:[%s1914_s29 + $0xa8] sm:$0xff]  ;;  %v433_v10 = vld [vmem:[%s1914_s29 + $0xa0] sm:$0xff] }
  0x4b   : > { %v526_v0 = vsel %vm490_vm8, %v1992_v55, 0.0 }
  0x4e   : > { %993 = vperm.xlu1 %1699, %v400_v20   ;;  %988 = vperm.xlu0 %1698, %v399_v21   ;;  %v2069_v20 = vadd.s32 88, %v1967_v39  ;;  %v762_v21 = vadd.f32 %v730_v14, %v658_v8  ;;  %v733_v8 = vsel %vm697_vm5, %v2024_v2, 0.0  ;;  %vm802_vm5 = vcmp.eq.s32.totalorder %v2036_v7, %v2028_v5 }
  0x50   : > { %vm495_vm8 = vcmp.eq.s32.totalorder %v2069_v20, %v1980_v49 }
  0x52   : > { %1160 = vperm.xlu1 %1699, %v413_v22   ;;  %998 = vperm.xlu0 %1698, %v401_v23   ;;  %v731_v22 = vsel %vm695_vm9, %v2024_v2, 0.0  ;;  %v2073_v23 = vadd.s32 80, %v1967_v39  ;;  %vm594_vm9 = vcmp.eq.s32.totalorder %v2036_v7, %v1982_v50 }
  0x53   : > { %v630_v1 = vsel %vm594_vm9, %v1996_v56, 0.0  ;;  %vm599_vm9 = vcmp.eq.s32.totalorder %v2069_v20, %v1982_v50 }
  0x56   : > { %1003 = vperm.xlu1 %1699, %v402_v24   ;;  %1165 = vperm.xlu0 %1698, %v414_v25   ;;  %v2076_v24 = vadd.s32 104, %v1967_v39  ;;  %v428_v25 = vld [vmem:[%s1914_s29 + $0x78] sm:$0xff] }
  0x5a   : > { %1008 = vperm.xlu1 %1699, %v403_v26   ;;  %1170 = vperm.xlu0 %1698, %v415_v27   ;;  %v427_v26 = vld [vmem:[%s1914_s29 + $0x70] sm:$0xff]  ;;  %v760_v27 = vadd.f32 %v728_v18, %v656_v15  ;;  %v662_v18 = vadd.f32 %v630_v1, %v526_v0 }
  0x5b   : > { %v439_v0 = vld [vmem:[%s1914_s29 + $0xd0] sm:$0xff] }
  0x5e   : > { %1013 = vperm.xlu1 %1699, %v404_v28   ;;  %1175 = vperm.xlu0 %1698, %v416_v29   ;;  %v521_v28 = vsel %vm485_vm10, %v1992_v55, 0.0  ;;  %v625_v29 = vsel %vm589_vm11, %v1996_v56, 0.0  ;;  %vm801_vm10 = vcmp.eq.s32.totalorder %v2009_v60, %v2028_v5  ;;  %vm696_vm11 = vcmp.eq.s32.totalorder %v2012_v61, %v1998_v57 }
  0x62   : > { %1018 = vperm.xlu1 %1699, %v405_v30   ;;  %1180 = vperm.xlu0 %1698, %v417_v31   ;;  %v834_v30 = vsel %vm798_vm12, %v2054_v17, 0.0  ;;  %v832_v31 = vsel %vm796_vm13, %v2054_v17, 0.0  ;;  %vm699_vm12 = vcmp.eq.s32.totalorder %v2033_v6, %v1998_v57  ;;  %vm493_vm13 = vcmp.eq.s32.totalorder %v2041_v11, %v1980_v49 }
  0x63   : > { %v2120_v43 = vadd.f32 %v834_v30, %v762_v21  ;;  %v2122_v44 = vadd.f32 %v832_v31, %v760_v27  ;;  %v735_v15 = vsel %vm699_vm12, %v2024_v2, 0.0  ;;  %v633_v21 = vsel %vm597_vm14, %v1996_v56, 0.0  ;;  %v436_v27 = vld [vmem:[%s1914_s29 + $0xb8] sm:$0xff] }
  0x64   : > { %v737_v6 = vsel %vm701_vm1, %v2024_v2, 0.0  ;;  %vm598_vm12 = vcmp.eq.s32.totalorder %v2073_v23, %v1982_v50  ;;  %vm497_vm14 = vcmp.eq.s32.totalorder %v2076_v24, %v1980_v49 }
  0x66   : > { %1023 = vperm.xlu1 %1699, %v406_v32   ;;  %1185 = vperm.xlu0 %1698, %v418_v33   ;;  %v2101_v32 = vadd.s32 96, %v1967_v39  ;;  %v763_v33 = vadd.f32 %v731_v22, %v659_v19  ;;  %v529_v19 = vsel %vm493_vm13, %v1992_v55, 0.0  ;;  %vm703_vm13 = vcmp.eq.s32.totalorder %v2069_v20, %v1998_v57 }
  0x68   : > { %v2137_v47 = vadd.f32 %v835_v36, %v763_v33  ;;  %v665_v33 = vadd.f32 %v633_v21, %v529_v19  ;;  %v839_v36 = vsel %vm803_vm4, %v2054_v17, 0.0  ;;  %vm600_vm1 = vcmp.eq.s32.totalorder %v2101_v32, %v1982_v50  ;;  %v442_v19 = vld [vmem:[%s1914_s29 + $0xe8] sm:$0xff]  ;;  %v441_v21 = vld [vmem:[%s1914_s29 + $0xe0] sm:$0xff] }
  0x6a   : > { %1028 = vperm.xlu1 %1699, %v407_v34   ;;  %1190 = vperm.xlu0 %1698, %v419_v35   ;;  %v2106_v34 = vadd.s32 120, %v1967_v39  ;;  %v2109_v35 = vadd.s32 112, %v1967_v39  ;;  %v769_v51 = vadd.f32 %v737_v6, %v665_v33 }
  0x6c   : > { %vm603_vm4 = vcmp.eq.s32.totalorder %v2106_v34, %v1982_v50 }
  0x6e   : > { %1033 = vperm.xlu1 %1699, %v408_v37   ;;  %1195 = vperm.xlu0 %1698, %v420_v38   ;;  %v657_v37 = vadd.f32 %v625_v29, %v521_v28  ;;  %v2113_v38 = vadd.s32 136, %v1967_v39  ;;  %v435_v28 = vld [vmem:[%s1914_s29 + $0xb0] sm:$0xff] }
  0x72   : > { %1038 = vperm.xlu1 %1699, %v409_v40   ;;  %1200 = vperm.xlu0 %1698, %v421_v41   ;;  %v2116_v40 = vadd.s32 128, %v1967_v39  ;;  %v430_v41 = vld [vmem:[%s1914_s29 + $0x88] sm:$0xff] }
  0x76   : > { %1043 = vperm.xlu1 %1699, %v410_v45   ;;  %1205 = vperm.xlu0 %1698, %v422_v46   ;;  %v729_v45 = vsel %vm693_vm15, %v2024_v2, 0.0  ;;  %v833_v46 = vsel %vm797_vm0, %v2054_v17, 0.0  ;;  %vm698_vm15 = vcmp.eq.s32.totalorder %v2036_v7, %v1998_v57  ;;  %vm800_vm0 = vcmp.eq.s32.totalorder %v2012_v61, %v2028_v5 }
  0x77   : > { %v761_v48 = vadd.f32 %v729_v45, %v657_v37  ;;  %v734_v22 = vsel %vm698_vm15, %v2024_v2, 0.0  ;;  %v836_v30 = vsel %vm800_vm0, %v2054_v17, 0.0  ;;  %v528_v7 = vsel %vm492_vm2, %v1992_v55, 0.0  ;;  %v438_v45 = vld [vmem:[%s1914_s29 + $0xc8] sm:$0xff] }
  0x78   : > { %v766_v60 = vadd.f32 %v734_v22, %v662_v18  ;;  %v632_v61 = vsel %vm596_vm3, %v1996_v56, 0.0  ;;  %v838_v37 = vsel %vm802_vm5, %v2054_v17, 0.0  ;;  %vm601_vm15 = vcmp.eq.s32.totalorder %v2076_v24, %v1982_v50 }
  0x79   : > { %v2175_v3 = vadd.f32 %v833_v46, %v761_v48  ;;  %v437_v46 = vld [vmem:[%s1914_s29 + $0xc0] sm:$0xff]  ;;  %vm496_vm0 = vcmp.eq.s32.totalorder %v2101_v32, %v1980_v49  ;;  %vm702_vm2 = vcmp.eq.s32.totalorder %v2073_v23, %v1998_v57  ;;  %vm499_vm3 = vcmp.eq.s32.totalorder %v2106_v34, %v1980_v49 }
  0x7a   : > { %1048 = vperm.xlu1 %1699, %v411_v52   ;;  %1210 = vperm.xlu0 %1698, %v423_v53   ;;  %v432_v52 = vld [vmem:[%s1914_s29 + $0x98] sm:$0xff]  ;;  %v431_v53 = vld [vmem:[%s1914_s29 + $0x90] sm:$0xff]  ;;  %v2259_v54 = vadd.f32 %v838_v37, %v766_v60  ;;  %vm807_vm5 = vcmp.eq.s32.totalorder %v2069_v20, %v2028_v5  ;;  %v636_v18 = vsel %vm600_vm1, %v1996_v56, 0.0  ;;  %vm501_vm1 = vcmp.eq.s32.totalorder %v2113_v38, %v1980_v49 }
  0x7b   : > { %v843_v33 = vsel %vm807_vm5, %v2054_v17, 0.0  ;;  %vm500_vm5 = vcmp.eq.s32.totalorder %v2116_v40, %v1980_v49 }
  0x7e   : > { %1053 = vperm.xlu1 %1699, %v412_v62   ;;  %1215 = vperm.xlu0 %1698, %v424_v63   ;;  %v527_v62 = vsel %vm491_vm6, %v1992_v55, 0.0  ;;  %v631_v63 = vsel %vm595_vm7, %v1996_v56, 0.0  ;;  %vm805_vm6 = vcmp.eq.s32.totalorder %v2041_v11, %v2028_v5  ;;  %vm700_vm7 = vcmp.eq.s32.totalorder %v2052_v16, %v1998_v57 }
  0x7f   : > { %v663_v14 = vadd.f32 %v631_v63, %v527_v62  ;;  %v531_v62 = vsel %vm495_vm8, %v1992_v55, 0.0  ;;  %v635_v63 = vsel %vm599_vm9, %v1996_v56, 0.0  ;;  %vm1088_vm8 = vcmask 261120  }
  0x80   : > { %vm707_vm9 = vcmp.eq.s32.totalorder %v2106_v34, %v1998_v57 }
  0x81   : > { %v767_v31 = vadd.f32 %v735_v15, %v663_v14  ;;  %v739_v14 = vsel %vm703_vm13, %v2024_v2, 0.0  ;;  %v532_v15 = vsel %vm496_vm0, %v1992_v55, 0.0  ;;  %vm809_vm13 = vcmp.eq.s32.totalorder %v2076_v24, %v2028_v5 }
  0x82   : > { %1225 = vperm.xlu1 %1699, %v426_v12   ;;  %1220 = vperm.xlu0 %1698, %v425_v13   ;;  %v660_v12 = vadd.f32 %v628_v59, %v524_v58  ;;  %v732_v13 = vsel %vm696_vm11, %v2024_v2, 0.0  ;;  %v841_v58 = vsel %vm805_vm6, %v2054_v17, 0.0  ;;  %v736_v59 = vsel %vm700_vm7, %v2024_v2, 0.0 }
  0x83   : > { %vm494_vm11 = vcmp.eq.s32.totalorder %v2073_v23, %v1980_v49  ;;  %v2284_v1 = vadd.f32 %v841_v58, %v769_v51  ;;  %vm705_vm6 = vcmp.eq.s32.totalorder %v2076_v24, %v1998_v57  ;;  %vm704_vm7 = vcmp.eq.s32.totalorder %v2101_v32, %v1998_v57 }
  0x84   : > { %v764_v29 = vadd.f32 %v732_v13, %v660_v12  ;;  %v533_v12 = vsel %vm497_vm14, %v1992_v55, 0.0  ;;  %v637_v13 = vsel %vm601_vm15, %v1996_v56, 0.0  ;;  %v741_v60 = vsel %vm705_vm6, %v2024_v2, 0.0 }
  0x85   : > { %v740_v6 = vsel %vm704_vm7, %v2024_v2, 0.0  ;;  %vm808_vm14 = vcmp.eq.s32.totalorder %v2101_v32, %v2028_v5  ;;  %v743_v20 = vsel %vm707_vm9, %v2024_v2, 0.0  ;;  %vm811_vm15 = vcmp.eq.s32.totalorder %v2106_v34, %v2028_v5 }
  0x86   : > { %1235 = vperm.xlu1 %1699, %v428_v25   ;;  %1230 = vperm.xlu0 %1698, %v427_v26   ;;  %v765_v25 = vadd.f32 %v733_v8, %v661_v4  ;;  %v837_v26 = vsel %vm801_vm10, %v2054_v17, 0.0  ;;  %v2253_v48 = vadd.f32 %v836_v30, %v764_v29  ;;  %vm804_vm10 = vcmp.eq.s32.totalorder %v2052_v16, %v2028_v5  ;;  %v440_v16 = vld [vmem:[%s1914_s29 + $0xd8] sm:$0xff] }
  0x87   : > { %v840_v11 = vsel %vm804_vm10, %v2054_v17, 0.0  ;;  %v667_v8 = vadd.f32 %v635_v63, %v531_v62  ;;  %v639_v29 = vsel %vm603_vm4, %v1996_v56, 0.0  ;;  %v668_v30 = vadd.f32 %v636_v18, %v532_v15 }
  0x88   : > { %vm498_vm10 = vcmp.eq.s32.totalorder %v2109_v35, %v1980_v49  ;;  %vm706_vm0 = vcmp.eq.s32.totalorder %v2109_v35, %v1998_v57  ;;  %v845_v63 = vsel %vm809_vm13, %v2054_v17, 0.0  ;;  %v844_v34 = vsel %vm808_vm14, %v2054_v17, 0.0 }
  0x89   : > { %v847_v24 = vsel %vm811_vm15, %v2054_v17, 0.0  ;;  %vm709_vm4 = vcmp.eq.s32.totalorder %v2113_v38, %v1998_v57  ;;  %vm604_vm6 = vcmp.eq.s32.totalorder %v2116_v40, %v1982_v50  ;;  %vm813_vm7 = vcmp.eq.s32.totalorder %v2113_v38, %v2028_v5 }
  0x8a   : > { %1245 = vperm.xlu1 %1699, %v430_v41   ;;  %1240 = vperm.xlu0 %1698, %v429_v42   ;;  %v2242_v41 = vadd.f32 %v837_v26, %v765_v25  ;;  %v2249_v42 = vadd.s32 152, %v1967_v39  ;;  %v738_v26 = vsel %vm702_vm2, %v2024_v2, 0.0  ;;  %vm605_vm2 = vcmp.eq.s32.totalorder %v2113_v38, %v1982_v50 }
  0x8b   : > { %v641_v18 = vsel %vm605_vm2, %v1996_v56, 0.0  ;;  %v2424_v38 = vadd.s32 144, %v1967_v39  ;;  %vm812_vm15 = vcmp.eq.s32.totalorder %v2116_v40, %v2028_v5 }
  0x8c   : > { %vm503_vm9 = vcmp.eq.s32.totalorder %v2249_v42, %v1980_v49 }
  0x8d   : > { %vm502_vm13 = vcmp.eq.s32.totalorder %v2424_v38, %v1980_v49  ;;  %vm606_vm14 = vcmp.eq.s32.totalorder %v2424_v38, %v1982_v50 }
  0x8e   : > { %1255 = vperm.xlu1 %1699, %v432_v52   ;;  %1250 = vperm.xlu0 %1698, %v431_v53   ;;  %v664_v52 = vadd.f32 %v632_v61, %v528_v7  ;;  %v2257_v53 = vadd.f32 %v839_v36, %v767_v31  ;;  %v771_v31 = vadd.f32 %v739_v14, %v667_v8  ;;  %v444_v7 = vld [vmem:[%s1914_s29 + $0xf8] sm:$0xff]  ;;  %v443_v61 = vld [vmem:[%s1914_s29 + $0xf0] sm:$0xff] }
  0x90   : > { %v768_v4 = vadd.f32 %v736_v59, %v664_v52  ;;  %v772_v59 = vadd.f32 %v740_v6, %v668_v30 }
  0x92   : > { %1265 = vperm.xlu1 %1699, %v434_v9   ;;  %1260 = vperm.xlu0 %1698, %v433_v10   ;;  %v530_v9 = vsel %vm494_vm11, %v1992_v55, 0.0  ;;  %v634_v10 = vsel %vm598_vm12, %v1996_v56, 0.0  ;;  %v2310_v22 = vadd.f32 %v840_v11, %v768_v4  ;;  %vm602_vm11 = vcmp.eq.s32.totalorder %v2109_v35, %v1982_v50 }
  0x93   : > { %v666_v25 = vadd.f32 %v634_v10, %v530_v9  ;;  %vm806_vm12 = vcmp.eq.s32.totalorder %v2073_v23, %v2028_v5  ;;  %v2378_v11 = vadd.f32 %v843_v33, %v771_v31  ;;  %v742_v4 = vsel %vm706_vm0, %v2024_v2, 0.0 }
  0x94   : > { %v842_v62 = vsel %vm806_vm12, %v2054_v17, 0.0  ;;  %v745_v33 = vsel %vm709_vm4, %v2024_v2, 0.0  ;;  %vm711_vm12 = vcmp.eq.s32.totalorder %v2249_v42, %v1998_v57  ;;  %vm815_vm0 = vcmp.eq.s32.totalorder %v2249_v42, %v2028_v5 }
  0x95   : > { %v770_v37 = vadd.f32 %v738_v26, %v666_v25  ;;  %vm814_vm4 = vcmp.eq.s32.totalorder %v2424_v38, %v2028_v5 }
  0x96   : > { %1275 = vperm.xlu1 %1699, %v436_v27   ;;  %1270 = vperm.xlu0 %1698, %v435_v28   ;;  %v669_v27 = vadd.f32 %v637_v13, %v533_v12  ;;  %v535_v28 = vsel %vm499_vm3, %v1992_v55, 0.0  ;;  %vm810_vm3 = vcmp.eq.s32.totalorder %v2109_v35, %v2028_v5  ;;  %v2391_v12 = vadd.f32 %v844_v34, %v772_v59 }
  0x97   : > { %v671_v36 = vadd.f32 %v639_v29, %v535_v28  ;;  %v2387_v9 = vadd.f32 %v842_v62, %v770_v37  ;;  %v537_v13 = vsel %vm501_vm1, %v1992_v55, 0.0  ;;  %v539_v59 = vsel %vm503_vm9, %v1992_v55, 0.0 }
  0x98   : > { %v773_v58 = vadd.f32 %v741_v60, %v669_v27  ;;  %v673_v31 = vadd.f32 %v641_v18, %v537_v13  ;;  %v468_v18 = vadd.s32 160, %v1967_v39  ;;  %vm710_vm1 = vcmp.eq.s32.totalorder %v2424_v38, %v1998_v57 }
  0x99   : > { %v850_v38 = vsel %vm814_vm4, %v2054_v17, 0.0 }
  0x9a   : > { %1285 = vperm.xlu1 %1699, %v438_v45   ;;  %1280 = vperm.xlu0 %1698, %v437_v46   ;;  %v534_v45 = vsel %vm498_vm10, %v1992_v55, 0.0  ;;  %v638_v46 = vsel %vm602_vm11, %v1996_v56, 0.0  ;;  %v2389_v10 = vadd.f32 %v845_v63, %v773_v58  ;;  %vm607_vm10 = vcmp.eq.s32.totalorder %v2249_v42, %v1982_v50 }
  0x9b   : > { %vm708_vm11 = vcmp.eq.s32.totalorder %v2116_v40, %v1998_v57  ;;  %v777_v58 = vadd.f32 %v745_v33, %v673_v31  ;;  %v643_v62 = vsel %vm607_vm10, %v1996_v56, 0.0  ;;  %v848_v31 = vsel %vm812_vm15, %v2054_v17, 0.0 }
  0x9c   : > { %vm504_vm2 = vcmp.eq.s32.totalorder %v468_v18, %v1980_v49 }
  0x9e   : > { %1295 = vperm.xlu1 %1699, %v440_v16   ;;  %1290 = vperm.xlu0 %1698, %v439_v0   ;;  %v775_v16 = vadd.f32 %v743_v20, %v671_v36  ;;  %v670_v0 = vadd.f32 %v638_v46, %v534_v45  ;;  %v640_v36 = vsel %vm604_vm6, %v1996_v56, 0.0  ;;  %v849_v45 = vsel %vm813_vm7, %v2054_v17, 0.0 }
  0x9f   : > { %vm816_vm6 = vcmp.eq.s32.totalorder %v468_v18, %v2028_v5 }
  0xa0   : > { %v2399_v35 = vadd.f32 %v847_v24, %v775_v16 }
  0xa2   : > { %1305 = vperm.xlu1 %1699, %v442_v19   ;;  %1300 = vperm.xlu0 %1698, %v441_v21   ;;  %v774_v19 = vadd.f32 %v742_v4, %v670_v0  ;;  %v846_v21 = vsel %vm810_vm3, %v2054_v17, 0.0  ;;  %vm608_vm3 = vcmp.eq.s32.totalorder %v468_v18, %v1982_v50 }
  0xa5   : > { %v909_v51 = vpop.permute.xlu1 %908  ;;  %v899_v52 = vpop.permute.xlu0 %898 }
  0xa6   : > { %1315 = vperm.xlu1 %1699, %v444_v7   ;;  %1310 = vperm.xlu0 %1698, %v443_v61   ;;  %v1056_v23 = vmul.f32 %v899_v52, %v2122_v44  ;;  %v1058_v14 = vmul.f32 %v909_v51, %v2120_v43  ;;  %v536_v61 = vsel %vm500_vm5, %v1992_v55, 0.0  ;;  %vm712_vm5 = vcmp.eq.s32.totalorder %v468_v18, %v1998_v57 }
  0xa7   : > { %v672_v16 = vadd.f32 %v640_v36, %v536_v61  ;;  %v2515_v18 = vadd.s32 192, %v1967_v39 }
  0xa8   : > { %v1089_v25 = vsel %vm1088_vm8, %v1056_v23, 0.0  ;;  %v1092_v60 = vsel %vm1088_vm8, %v1058_v14, 0.0  ;;  %v744_v23 = vsel %vm708_vm11, %v2024_v2, 0.0 }
  0xa9   : > { %v914_v32 = vpop.permute.xlu1 %913  ;;  %v904_v8 = vpop.permute.xlu0 %903 }
  0xaa   : > { %v1057_v15 = vmul.f32 %v904_v8, %v2175_v3  ;;  %v1059_v26 = vmul.f32 %v914_v32, %v2137_v47  ;;  %v675_v32 = vadd.f32 %v643_v62, %v539_v59 }
  0xac   : > { %v1090_v27 = vsel %vm1088_vm8, %v1057_v15, 0.0  ;;  %v1094_v37 = vsel %vm1088_vm8, %v1059_v26, 0.0  ;;  %v747_v15 = vsel %vm711_vm12, %v2024_v2, 0.0 }
  0xad   : > { %v1091_v28 = vadd.f32 %v1090_v27, %v1089_v25  ;;  %v924_v29 = vpop.permute.xlu1 %923  ;;  %v919_v30 = vpop.permute.xlu0 %918  ;;  %v538_v27 = vsel %vm502_vm13, %v1992_v55, 0.0 }
  0xae   : > { %v1060_v6 = vmul.f32 %v919_v30, %v2253_v48  ;;  %v1061_v20 = vmul.f32 %v924_v29, %v2242_v41  ;;  %v2454_v29 = vadd.f32 %v846_v21, %v774_v19  ;;  %v776_v30 = vadd.f32 %v744_v23, %v672_v16 }
  0xaf   : > { %v1093_v7 = vadd.f32 %v1092_v60, %v1091_v28  ;;  %v642_v28 = vsel %vm606_vm14, %v1996_v56, 0.0  ;;  %v851_v19 = vsel %vm815_vm0, %v2054_v17, 0.0  ;;  %v644_v23 = vsel %vm608_vm3, %v1996_v56, 0.0 }
  0xb0   : > { %v1096_v63 = vsel %vm1088_vm8, %v1060_v6, 0.0  ;;  %v1098_v24 = vsel %vm1088_vm8, %v1061_v20, 0.0  ;;  %2900 = vst [vmem:[#allocation10_spill] sm:$0xff] %v2454_v29  ;;  %v779_v6 = vadd.f32 %v747_v15, %v675_v32  ;;  %v674_v21 = vadd.f32 %v642_v28, %v538_v27 }
  0xb1   : > { %v1095_v46 = vadd.f32 %v1094_v37, %v1093_v7  ;;  %v934_v51 = vpop.permute.xlu1 %933  ;;  %v929_v52 = vpop.permute.xlu0 %928  ;;  %v2461_v37 = vadd.f32 %v849_v45, %v777_v58  ;;  %v746_v45 = vsel %vm710_vm1, %v2024_v2, 0.0  ;;  %v469_v58 = vadd.s32 168, %v1967_v39 }
  0xb2   : > { %v1062_v34 = vmul.f32 %v929_v52, %v2259_v54  ;;  %v1063_v4 = vmul.f32 %v934_v51, %v2257_v53  ;;  %v2471_v52 = vadd.f32 %v848_v31, %v776_v30  ;;  %v2477_v62 = vadd.f32 %v851_v19, %v779_v6 }
  0xb3   : > { %v1097_v0 = vadd.f32 %v1096_v63, %v1095_v46  ;;  %2901 = vst [vmem:[#allocation11_spill] sm:$0xff] %v2461_v37  ;;  %v2487_v32 = vadd.s32 176, %v1967_v39  ;;  %vm505_vm7 = vcmp.eq.s32.totalorder %v469_v58, %v1980_v49  ;;  %vm609_vm9 = vcmp.eq.s32.totalorder %v469_v58, %v1982_v50 }
  0xb4   : > { %v1100_v25 = vsel %vm1088_vm8, %v1062_v34, 0.0  ;;  %v1102_v33 = vsel %vm1088_vm8, %v1063_v4, 0.0  ;;  %2902 = vst [vmem:[#allocation12_spill] sm:$0xff] %v2471_v52  ;;  %v778_v4 = vadd.f32 %v746_v45, %v674_v21  ;;  %v852_v30 = vsel %vm816_vm6, %v2054_v17, 0.0 }
  0xb5   : > { %v1099_v8 = vadd.f32 %v1098_v24, %v1097_v0  ;;  %v944_v13 = vpop.permute.xlu1 %943  ;;  %v939_v14 = vpop.permute.xlu0 %938  ;;  %v540_v0 = vsel %vm504_vm2, %v1992_v55, 0.0  ;;  %vm713_vm10 = vcmp.eq.s32.totalorder %v469_v58, %v1998_v57  ;;  %vm506_vm11 = vcmp.eq.s32.totalorder %v2487_v32, %v1980_v49 }
  0xb6   : > { %v1064_v26 = vmul.f32 %v939_v14, %v2310_v22  ;;  %v1065_v60 = vmul.f32 %v944_v13, %v2284_v1  ;;  %v2492_v13 = vadd.s32 184, %v1967_v39  ;;  %v2502_v31 = vadd.f32 %v850_v38, %v778_v4 }
  0xb7   : > { %v1101_v40 = vadd.f32 %v1100_v25, %v1099_v8  ;;  %v676_v25 = vadd.f32 %v644_v23, %v540_v0  ;;  %vm610_vm12 = vcmp.eq.s32.totalorder %v2487_v32, %v1982_v50  ;;  %vm817_vm15 = vcmp.eq.s32.totalorder %v469_v58, %v2028_v5 }
  0xb8   : > { %v1104_v20 = vsel %vm1088_vm8, %v1064_v26, 0.0  ;;  %v1106_v59 = vsel %vm1088_vm8, %v1065_v60, 0.0  ;;  %2903 = vst [vmem:[#allocation13_spill] sm:$0xff] %v2502_v31  ;;  %v645_v60 = vsel %vm609_vm9, %v1996_v56, 0.0  ;;  %vm507_vm13 = vcmp.eq.s32.totalorder %v2492_v13, %v1980_v49 }
  0xb9   : > { %v1103_v7 = vadd.f32 %v1102_v33, %v1101_v40  ;;  %v954_v61 = vpop.permute.xlu1 %953  ;;  %v949_v36 = vpop.permute.xlu0 %948  ;;  %v748_v40 = vsel %vm712_vm5, %v2024_v2, 0.0  ;;  %v541_v33 = vsel %vm505_vm7, %v1992_v55, 0.0  ;;  %vm611_vm14 = vcmp.eq.s32.totalorder %v2492_v13, %v1982_v50 }
  0xba   : > { %v1066_v46 = vmul.f32 %v949_v36, %v2387_v9  ;;  %v1067_v42 = vmul.f32 %v954_v61, %v2378_v11  ;;  %v780_v61 = vadd.f32 %v748_v40, %v676_v25  ;;  %v749_v36 = vsel %vm713_vm10, %v2024_v2, 0.0 }
  0xbb   : > { %v1105_v51 = vadd.f32 %v1104_v20, %v1103_v7  ;;  %v677_v45 = vadd.f32 %v645_v60, %v541_v33  ;;  %vm714_vm0 = vcmp.eq.s32.totalorder %v2487_v32, %v1998_v57  ;;  %vm715_vm1 = vcmp.eq.s32.totalorder %v2492_v13, %v1998_v57 }
  0xbc   : > { %v1108_v24 = vsel %vm1088_vm8, %v1066_v46, 0.0  ;;  %v1110_v14 = vsel %vm1088_vm8, %v1067_v42, 0.0  ;;  %v542_v46 = vsel %vm506_vm11, %v1992_v55, 0.0  ;;  %v647_v42 = vsel %vm611_vm14, %v1996_v56, 0.0 }
  0xbd   : > { %v1107_v63 = vadd.f32 %v1106_v59, %v1105_v51  ;;  %v964_v34 = vpop.permute.xlu1 %963  ;;  %v959_v16 = vpop.permute.xlu0 %958  ;;  %v646_v51 = vsel %vm610_vm12, %v1996_v56, 0.0  ;;  %v543_v59 = vsel %vm507_vm13, %v1992_v55, 0.0  ;;  %vm508_vm2 = vcmp.eq.s32.totalorder %v2515_v18, %v1980_v49 }
  0xbe   : > { %v1068_v15 = vmul.f32 %v959_v16, %v2391_v12  ;;  %v1069_v6 = vmul.f32 %v964_v34, %v2389_v10  ;;  %vm612_vm3 = vcmp.eq.s32.totalorder %v2515_v18, %v1982_v50  ;;  %v2536_v58 = vadd.s32 200, %v1967_v39 }
  0xbf   : > { %v1109_v8 = vadd.f32 %v1108_v24, %v1107_v63  ;;  %v853_v16 = vsel %vm817_vm15, %v2054_v17, 0.0  ;;  %v678_v0 = vadd.f32 %v646_v51, %v542_v46  ;;  %v750_v38 = vsel %vm714_vm0, %v2024_v2, 0.0 }
  0xc0   : > { %v1112_v7 = vsel %vm1088_vm8, %v1068_v15, 0.0  ;;  %v1114_v63 = vsel %vm1088_vm8, %v1069_v6, 0.0  ;;  %vm818_vm4 = vcmp.eq.s32.totalorder %v2487_v32, %v2028_v5  ;;  %v751_v15 = vsel %vm715_vm1, %v2024_v2, 0.0 }
  0xc1   : > { %v1111_v26 = vadd.f32 %v1110_v14, %v1109_v8  ;;  %v974_v27 = vpop.permute.xlu1 %973  ;;  %v969_v28 = vpop.permute.xlu0 %968  ;;  %v2545_v8 = vadd.f32 %v852_v30, %v780_v61  ;;  %v679_v14 = vadd.f32 %v647_v42, %v543_v59  ;;  %v544_v25 = vsel %vm508_vm2, %v1992_v55, 0.0 }
  0xc2   : > { %v1070_v34 = vmul.f32 %v969_v28, %v2454_v29  ;;  %v781_v28 = vadd.f32 %v749_v36, %v677_v45  ;;  %vm716_vm5 = vcmp.eq.s32.totalorder %v2515_v18, %v1998_v57  ;;  %vm509_vm6 = vcmp.eq.s32.totalorder %v2536_v58, %v1980_v49 }
  0xc3   : > { %v1113_v19 = vadd.f32 %v1112_v7, %v1111_v26  ;;  %v648_v26 = vsel %vm612_vm3, %v1996_v56, 0.0  ;;  %vm613_vm7 = vcmp.eq.s32.totalorder %v2536_v58, %v1982_v50  ;;  %v1071_v40 = vmul.f32 %v974_v27, %v2399_v35 }
  0xc4   : > { %v1116_v32 = vsel %vm1088_vm8, %v1070_v34, 0.0  ;;  %v782_v30 = vadd.f32 %v750_v38, %v678_v0  ;;  %vm819_vm9 = vcmp.eq.s32.totalorder %v2492_v13, %v2028_v5  ;;  %v854_v7 = vsel %vm818_vm4, %v2054_v17, 0.0 }
  0xc5   : > { %v2520_v21 = vpop.permute.xlu1 %983  ;;  %v979_v20 = vpop.permute.xlu0 %978  ;;  %v1115_v23 = vadd.f32 %v1114_v63, %v1113_v19  ;;  %v783_v61 = vadd.f32 %v751_v15, %v679_v14  ;;  %v680_v36 = vadd.f32 %v648_v26, %v544_v25  ;;  %v752_v19 = vsel %vm716_vm5, %v2024_v2, 0.0 }
  0xc6   : > { %vm820_vm10 = vcmp.eq.s32.totalorder %v2515_v18, %v2028_v5  ;;  %v545_v27 = vsel %vm509_vm6, %v1992_v55, 0.0  ;;  %v649_v46 = vsel %vm613_vm7, %v1996_v56, 0.0  ;;  %v855_v13 = vsel %vm819_vm9, %v2054_v17, 0.0 }
  0xc7   : > { %v1117_v33 = vadd.f32 %v1116_v32, %v1115_v23  ;;  %vm717_vm11 = vcmp.eq.s32.totalorder %v2536_v58, %v1998_v57  ;;  %v2577_v51 = vadd.s32 208, %v1967_v39  ;;  %v2580_v45 = vadd.s32 216, %v1967_v39 }
  0xc8   : > { %v1118_v59 = vsel %vm1088_vm8, %v1071_v40, 0.0  ;;  %v1072_v42 = vmul.f32 %v979_v20, %v2471_v52  ;;  %v2584_v18 = vadd.f32 %v853_v16, %v781_v28  ;;  %v2586_v63 = vadd.f32 %v854_v7, %v782_v30 }
  0xc9   : > { %v2541_v24 = vpop.permute.xlu1 %993  ;;  %v2543_v4 = vpop.permute.xlu0 %988  ;;  %v1119_v34 = vadd.f32 %v1118_v59, %v1117_v33  ;;  %v784_v38 = vadd.f32 %v752_v19, %v680_v36  ;;  %v856_v14 = vsel %vm820_vm10, %v2054_v17, 0.0  ;;  %v681_v15 = vadd.f32 %v649_v46, %v545_v27 }
  0xca   : > { %v2593_v25 = vadd.f32 %v855_v13, %v783_v61  ;;  %v753_v26 = vsel %vm717_vm11, %v2024_v2, 0.0  ;;  %vm821_vm12 = vcmp.eq.s32.totalorder %v2536_v58, %v2028_v5  ;;  %v2599_v20 = vadd.s32 224, %v1967_v39 }
  0xcb   : > { %vm510_vm13 = vcmp.eq.s32.totalorder %v2577_v51, %v1980_v49  ;;  %vm614_vm14 = vcmp.eq.s32.totalorder %v2577_v51, %v1982_v50  ;;  %vm718_vm15 = vcmp.eq.s32.totalorder %v2577_v51, %v1998_v57  ;;  %vm511_vm0 = vcmp.eq.s32.totalorder %v2580_v45, %v1980_v49 }
  0xcc   : > { %v1073_v16 = vmul.f32 %v2520_v21, %v2461_v37  ;;  %v1120_v58 = vsel %vm1088_vm8, %v1072_v42, 0.0  ;;  %vm615_vm1 = vcmp.eq.s32.totalorder %v2580_v45, %v1982_v50  ;;  %v2615_v28 = vadd.s32 232, %v1967_v39 }
  0xcd   : > { %v2563_v60 = vpop.permute.xlu1 %1160  ;;  %v2565_v6 = vpop.permute.xlu0 %998  ;;  %v1121_v40 = vadd.f32 %v1120_v58, %v1119_v34  ;;  %v2621_v33 = vadd.f32 %v856_v14, %v784_v38  ;;  %v785_v7 = vadd.f32 %v753_v26, %v681_v15  ;;  %v857_v61 = vsel %vm821_vm12, %v2054_v17, 0.0 }
  0xce   : > { %v546_v21 = vsel %vm510_vm13, %v1992_v55, 0.0  ;;  %v650_v36 = vsel %vm614_vm14, %v1996_v56, 0.0  ;;  %v754_v19 = vsel %vm718_vm15, %v2024_v2, 0.0  ;;  %vm822_vm2 = vcmp.eq.s32.totalorder %v2577_v51, %v2028_v5 }
  0xcf   : > { %v547_v27 = vsel %vm511_vm0, %v1992_v55, 0.0  ;;  %v651_v46 = vsel %vm615_vm1, %v1996_v56, 0.0  ;;  %vm512_vm3 = vcmp.eq.s32.totalorder %v2599_v20, %v1980_v49  ;;  %vm616_vm4 = vcmp.eq.s32.totalorder %v2599_v20, %v1982_v50 }
  0xd0   : > { %v1122_v13 = vsel %vm1088_vm8, %v1073_v16, 0.0  ;;  %v1074_v59 = vmul.f32 %v2543_v4, %v2502_v31  ;;  %vm719_vm5 = vcmp.eq.s32.totalorder %v2580_v45, %v1998_v57  ;;  %vm513_vm6 = vcmp.eq.s32.totalorder %v2615_v28, %v1980_v49 }
  0xd1   : > { %v2588_v0 = vpop.permute.xlu1 %1003  ;;  %v2590_v23 = vpop.permute.xlu0 %1165  ;;  %v1123_v42 = vadd.f32 %v1122_v13, %v1121_v40  ;;  %v2644_v14 = vadd.f32 %v857_v61, %v785_v7  ;;  %v682_v15 = vadd.f32 %v650_v36, %v546_v21  ;;  %vm617_vm7 = vcmp.eq.s32.totalorder %v2615_v28, %v1982_v50 }
  0xd2   : > { %v683_v26 = vadd.f32 %v651_v46, %v547_v27  ;;  %vm823_vm9 = vcmp.eq.s32.totalorder %v2580_v45, %v2028_v5  ;;  %v548_v4 = vsel %vm512_vm3, %v1992_v55, 0.0  ;;  %v652_v16 = vsel %vm616_vm4, %v1996_v56, 0.0 }
  0xd3   : > { %v755_v58 = vsel %vm719_vm5, %v2024_v2, 0.0  ;;  %vm720_vm10 = vcmp.eq.s32.totalorder %v2599_v20, %v1998_v57  ;;  %v549_v40 = vsel %vm513_vm6, %v1992_v55, 0.0  ;;  %vm721_vm11 = vcmp.eq.s32.totalorder %v2615_v28, %v1998_v57 }
  0xd4   : > { %v1075_v7 = vmul.f32 %v2541_v24, %v2477_v62  ;;  %v1124_v61 = vsel %vm1088_vm8, %v1074_v59, 0.0  ;;  %v653_v21 = vsel %vm617_vm7, %v1996_v56, 0.0  ;;  %v478_v36 = vadd.s32 240, %v1967_v39 }
  0xd5   : > { %v2617_v32 = vpop.permute.xlu1 %1008  ;;  %v2619_v30 = vpop.permute.xlu0 %1170  ;;  %v1125_v27 = vadd.f32 %v1124_v61, %v1123_v42  ;;  %v786_v31 = vadd.f32 %v754_v19, %v682_v15  ;;  %v858_v52 = vsel %vm822_vm2, %v2054_v17, 0.0  ;;  %v684_v37 = vadd.f32 %v652_v16, %v548_v4 }
  0xd6   : > { %v787_v29 = vadd.f32 %v755_v58, %v683_v26  ;;  %v859_v24 = vsel %vm823_vm9, %v2054_v17, 0.0  ;;  %v756_v59 = vsel %vm720_vm10, %v2024_v2, 0.0  ;;  %vm824_vm12 = vcmp.eq.s32.totalorder %v2599_v20, %v2028_v5 }
  0xd7   : > { %v685_v42 = vadd.f32 %v653_v21, %v549_v40  ;;  %v757_v19 = vsel %vm721_vm11, %v2024_v2, 0.0  ;;  %vm825_vm13 = vcmp.eq.s32.totalorder %v2615_v28, %v2028_v5  ;;  %v2681_v51 = vadd.s32 248, %v1967_v39 }
  0xd8   : > { %v1126_v45 = vsel %vm1088_vm8, %v1075_v7, 0.0  ;;  %v1076_v15 = vmul.f32 %v2565_v6, %v2545_v8  ;;  %vm514_vm14 = vcmp.eq.s32.totalorder %v478_v36, %v1980_v49  ;;  %vm618_vm15 = vcmp.eq.s32.totalorder %v478_v36, %v1982_v50 }
  0xd9   : > { %v1014_v34 = vpop.permute.xlu1 %1013  ;;  %v2642_v38 = vpop.permute.xlu0 %1175  ;;  %v1127_v20 = vadd.f32 %v1126_v45, %v1125_v27  ;;  %v2688_v16 = vadd.f32 %v858_v52, %v786_v31  ;;  %v788_v58 = vadd.f32 %v756_v59, %v684_v37  ;;  %v860_v28 = vsel %vm824_vm12, %v2054_v17, 0.0 }
  0xda   : > { %v1077_v39 = vmul.f32 %v2588_v0, %v2584_v18  ;;  %v2693_v40 = vadd.f32 %v859_v24, %v787_v29  ;;  %v861_v7 = vsel %vm825_vm13, %v2054_v17, 0.0  ;;  %vm722_vm0 = vcmp.eq.s32.totalorder %v478_v36, %v1998_v57 }
  0xdb   : > { %v789_v6 = vadd.f32 %v757_v19, %v685_v42  ;;  %v550_v61 = vsel %vm514_vm14, %v1992_v55, 0.0  ;;  %v654_v21 = vsel %vm618_vm15, %v1996_v56, 0.0  ;;  %vm826_vm1 = vcmp.eq.s32.totalorder %v478_v36, %v2028_v5 }
  0xdc   : > { %v1128_v37 = vsel %vm1088_vm8, %v1076_v15, 0.0  ;;  %v1319_v52 = vmul.f32 %v2590_v23, %v2175_v3  ;;  %v1078_v29 = vmul.f32 %v2617_v32, %v2586_v63  ;;  %vm515_vm2 = vcmp.eq.s32.totalorder %v2681_v51, %v1980_v49 }
  0xdd   : > { %v1019_v46 = vpop.permute.xlu1 %1018  ;;  %v1181_v13 = vpop.permute.xlu0 %1180  ;;  %v1318_v31 = vmul.f32 %v2563_v60, %v2122_v44  ;;  %v1129_v0 = vadd.f32 %v1128_v37, %v1127_v20  ;;  %v2709_v59 = vadd.f32 %v860_v28, %v788_v58  ;;  %v758_v42 = vsel %vm722_vm0, %v2024_v2, 0.0 }
  0xde   : > { %v1130_v19 = vsel %vm1088_vm8, %v1077_v39, 0.0  ;;  %v1320_v3 = vmul.f32 %v2619_v30, %v2120_v43  ;;  %v1079_v23 = vmul.f32 %v1014_v34, %v2593_v25  ;;  %vm619_vm3 = vcmp.eq.s32.totalorder %v2681_v51, %v1982_v50 }
  0xdf   : > { %v2718_v49 = vadd.f32 %v861_v7, %v789_v6  ;;  %v686_v44 = vadd.f32 %v654_v21, %v550_v61  ;;  %v862_v60 = vsel %vm826_vm1, %v2054_v17, 0.0  ;;  %v551_v32 = vsel %vm515_vm2, %v1992_v55, 0.0 }
  0xe0   : > { %v1351_v45 = vsel %vm1088_vm8, %v1319_v52, 0.0  ;;  %v1132_v15 = vsel %vm1088_vm8, %v1078_v29, 0.0  ;;  %v1321_v43 = vmul.f32 %v2642_v38, %v2137_v47  ;;  %v1080_v30 = vmul.f32 %v1019_v46, %v2621_v33 }
  0xe1   : > { %v1024_v26 = vpop.permute.xlu1 %1023  ;;  %v1186_v4 = vpop.permute.xlu0 %1185  ;;  %v1350_v50 = vsel %vm1088_vm8, %v1318_v31, 0.0  ;;  %v1131_v34 = vadd.f32 %v1130_v19, %v1129_v0  ;;  %v655_v28 = vsel %vm619_vm3, %v1996_v56, 0.0  ;;  %vm723_vm4 = vcmp.eq.s32.totalorder %v2681_v51, %v1998_v57 }
  0xe2   : > { %v1353_v55 = vsel %vm1088_vm8, %v1320_v3, 0.0  ;;  %v1134_v36 = vsel %vm1088_vm8, %v1079_v23, 0.0  ;;  %v1322_v39 = vmul.f32 %v1181_v13, %v2253_v48  ;;  %v1081_v47 = vmul.f32 %v1024_v26, %v2644_v14 }
  0xe3   : > { %v1352_v38 = vadd.f32 %v1351_v45, %v1350_v50  ;;  %v1133_v46 = vadd.f32 %v1132_v15, %v1131_v34  ;;  %v790_v7 = vadd.f32 %v758_v42, %v686_v44  ;;  %vm827_vm5 = vcmp.eq.s32.totalorder %v2681_v51, %v2028_v5 }
  0xe4   : > { %v1355_v6 = vsel %vm1088_vm8, %v1321_v43, 0.0  ;;  %v1136_v56 = vsel %vm1088_vm8, %v1080_v30, 0.0  ;;  %v1323_v61 = vmul.f32 %v1186_v4, %v2242_v41  ;;  %v687_v13 = vadd.f32 %v655_v28, %v551_v32 }
  0xe5   : > { %v1029_v27 = vpop.permute.xlu1 %1028  ;;  %v1191_v24 = vpop.permute.xlu0 %1190  ;;  %v1354_v37 = vadd.f32 %v1353_v55, %v1352_v38  ;;  %v1135_v52 = vadd.f32 %v1134_v36, %v1133_v46  ;;  %v759_v26 = vsel %vm723_vm4, %v2024_v2, 0.0  ;;  %v1357_v31 = vsel %vm1088_vm8, %v1322_v39, 0.0 }
  0xe6   : > { %v1082_v21 = vmul.f32 %v1029_v27, %v2688_v16  ;;  %v1138_v0 = vsel %vm1088_vm8, %v1081_v47, 0.0  ;;  %v1324_v42 = vmul.f32 %v1191_v24, %v2259_v54  ;;  %v863_v19 = vsel %vm827_vm5, %v2054_v17, 0.0 }
  0xe7   : > { %v1356_v4 = vadd.f32 %v1355_v6, %v1354_v37  ;;  %v1137_v27 = vadd.f32 %v1136_v56, %v1135_v52  ;;  %v1359_v3 = vsel %vm1088_vm8, %v1323_v61, 0.0  ;;  %v2759_v45 = vadd.f32 %v862_v60, %v790_v7 }
  0xe8   : > { %v1140_v57 = vsel %vm1088_vm8, %v1082_v21, 0.0  ;;  %v791_v15 = vadd.f32 %v759_v26, %v687_v13  ;;  %v1361_v43 = vsel %vm1088_vm8, %v1324_v42, 0.0  ;;  %vm1467_vm9 = vcmask 7168  }
  0xe9   : > { %v1034_v20 = vpop.permute.xlu1 %1033  ;;  %v1196_v58 = vpop.permute.xlu0 %1195  ;;  %v1358_v44 = vadd.f32 %v1357_v31, %v1356_v4  ;;  %v1139_v32 = vadd.f32 %v1138_v0, %v1137_v27 }
  0xea   : > { %v1083_v41 = vmul.f32 %v1034_v20, %v2693_v40  ;;  %v1325_v2 = vmul.f32 %v1196_v58, %v2257_v53  ;;  %v2768_v36 = vadd.f32 %v863_v19, %v791_v15  ;;  %v2904_v15 = vld [vmem:[#allocation10_spill] sm:$0xff] }
  0xeb   : > { %v1360_v30 = vadd.f32 %v1359_v3, %v1358_v44  ;;  %v1141_v50 = vadd.f32 %v1140_v57, %v1139_v32 }
  0xec   : > { %v1142_v5 = vsel %vm1088_vm8, %v1083_v41, 0.0  ;;  %v1363_v53 = vsel %vm1088_vm8, %v1325_v2, 0.0 }
  0xed   : > { %v1039_v29 = vpop.permute.xlu1 %1038  ;;  %v1201_v48 = vpop.permute.xlu0 %1200  ;;  %v1362_v58 = vadd.f32 %v1361_v43, %v1360_v30  ;;  %v1143_v60 = vadd.f32 %v1142_v5, %v1141_v50 }
  0xee   : > { %v1084_v23 = vmul.f32 %v1039_v29, %v2709_v59  ;;  %v1326_v17 = vmul.f32 %v1201_v48, %v2310_v22 }
  0xef   : > { %v1364_v46 = vadd.f32 %v1363_v53, %v1362_v58  ;;  %v2906_v58 = vld [vmem:[#allocation12_spill] sm:$0xff] }
  0xf0   : > { %v1144_v34 = vsel %vm1088_vm8, %v1084_v23, 0.0  ;;  %v1365_v39 = vsel %vm1088_vm8, %v1326_v17, 0.0 }
  0xf1   : > { %v1044_v54 = vpop.permute.xlu1 %1043  ;;  %v1206_v24 = vpop.permute.xlu0 %1205  ;;  %v1145_v7 = vadd.f32 %v1144_v34, %v1143_v60  ;;  %v1366_v56 = vadd.f32 %v1365_v39, %v1364_v46  ;;  %v2905_v34 = vld [vmem:[#allocation11_spill] sm:$0xff] }
  0xf2   : > { %v1085_v51 = vmul.f32 %v1044_v54, %v2718_v49  ;;  %v1327_v20 = vmul.f32 %v1206_v24, %v2284_v1 }
  0xf4   : > { %v1146_v22 = vsel %vm1088_vm8, %v1085_v51, 0.0  ;;  %v1367_v6 = vsel %vm1088_vm8, %v1327_v20, 0.0 }
  0xf5   : > { %v1049_v28 = vpop.permute.xlu1 %1048  ;;  %v1211_v55 = vpop.permute.xlu0 %1210  ;;  %v1147_v61 = vadd.f32 %v1146_v22, %v1145_v7  ;;  %v1368_v13 = vadd.f32 %v1367_v6, %v1366_v56  ;;  %v2907_v6 = vld [vmem:[#allocation13_spill] sm:$0xff] }
  0xf6   : > { %v1086_v47 = vmul.f32 %v1049_v28, %v2759_v45  ;;  %v1328_v38 = vmul.f32 %v1211_v55, %v2387_v9 }
  0xf8   : > { %v1148_v1 = vsel %vm1088_vm8, %v1086_v47, 0.0  ;;  %v1369_v52 = vsel %vm1088_vm8, %v1328_v38, 0.0 }
  0xf9   : > { %v1054_v21 = vpop.permute.xlu1 %1053  ;;  %v1216_v37 = vpop.permute.xlu0 %1215  ;;  %v1149_v26 = vadd.f32 %v1148_v1, %v1147_v61  ;;  %v1370_v0 = vadd.f32 %v1369_v52, %v1368_v13 }
  0xfa   : > { %v1087_v29 = vmul.f32 %v1054_v21, %v2768_v36  ;;  %v1329_v48 = vmul.f32 %v1216_v37, %v2378_v11 }
  0xfc   : > { %v1150_v9 = vsel %vm1088_vm8, %v1087_v29, 0.0  ;;  %v1371_v31 = vsel %vm1088_vm8, %v1329_v48, 0.0 }
  0xfd   : > { %v1151_v42 = vadd.f32 %v1150_v9, %v1149_v26  ;;  %v1226_v41 = vpop.permute.xlu1 %1225  ;;  %v1221_v4 = vpop.permute.xlu0 %1220  ;;  %v1372_v57 = vadd.f32 %v1371_v31, %v1370_v0 }
  0xfe   : > { %v1331_v27 = vmul.f32 %v1226_v41, %v2389_v10  ;;  %v1330_v19 = vmul.f32 %v1221_v4, %v2391_v12 }
  0xff   : > { %v1152_v3 = vrot.slane %v1151_v42, 4 }
 0x100   : > { %v1373_v2 = vsel %vm1088_vm8, %v1330_v19, 0.0  ;;  %v1375_v54 = vsel %vm1088_vm8, %v1331_v27, 0.0 }
 0x101   : > { %v1153_v23 = vadd.f32 %v1152_v3, %v1151_v42  ;;  %v1374_v11 = vadd.f32 %v1373_v2, %v1372_v57  ;;  %v1236_v44 = vpop.permute.xlu1 %1235  ;;  %v1231_v32 = vpop.permute.xlu0 %1230 }
 0x102   : > { %v1333_v24 = vmul.f32 %v1236_v44, %v2399_v35  ;;  %v1332_v43 = vmul.f32 %v1231_v32, %v2904_v15 }
 0x103   : > { %v1154_v5 = vrot.slane %v1153_v23, 2  ;;  %v1376_v17 = vadd.f32 %v1375_v54, %v1374_v11 }
 0x104   : > { %v1377_v10 = vsel %vm1088_vm8, %v1332_v43, 0.0  ;;  %v1379_v53 = vsel %vm1088_vm8, %v1333_v24, 0.0 }
 0x105   : > { %v1155_v51 = vadd.f32 %v1154_v5, %v1153_v23  ;;  %v1378_v12 = vadd.f32 %v1377_v10, %v1376_v17  ;;  %v1246_v30 = vpop.permute.xlu1 %1245  ;;  %v1241_v50 = vpop.permute.xlu0 %1240 }
 0x106   : > { %v1335_v20 = vmul.f32 %v1246_v30, %v2905_v34  ;;  %v1334_v60 = vmul.f32 %v1241_v50, %v2906_v58 }
 0x107   : > { %v1156_v28 = vrot.slane %v1155_v51, 1  ;;  %v1380_v55 = vadd.f32 %v1379_v53, %v1378_v12 }
 0x108   : > { %v1381_v35 = vsel %vm1088_vm8, %v1334_v60, 0.0  ;;  %v1383_v46 = vsel %vm1088_vm8, %v1335_v20, 0.0 }
 0x109   : > { %v2792_v39 = vadd.f32 %v1156_v28, %v1155_v51  ;;  %v1382_v22 = vadd.f32 %v1381_v35, %v1380_v55  ;;  %v1256_v47 = vpop.permute.xlu1 %1255  ;;  %v1251_v38 = vpop.permute.xlu0 %1250 }
 0x10a   : > { %v1337_v7 = vmul.f32 %v1256_v47, %v2477_v62  ;;  %v1336_v1 = vmul.f32 %v1251_v38, %v2907_v6 }
 0x10b   : > { %v1419_v56 = vand.u32 2147483647, %v2792_v39  ;;  %v1384_v61 = vadd.f32 %v1383_v46, %v1382_v22  ;;  %vm1444_vm6 = vcmp.ge.f32.partialorder %v2792_v39, 0.0 }
 0x10c   : > { %v1385_v21 = vsel %vm1088_vm8, %v1336_v1, 0.0  ;;  %v1387_v13 = vsel %vm1088_vm8, %v1337_v7, 0.0 }
 0x10d   : > { %v1420_v37 = vsub.f32 0.0, %v1419_v56  ;;  %v1386_v52 = vadd.f32 %v1385_v21, %v1384_v61  ;;  %v1266_v29 = vpop.permute.xlu1 %1265  ;;  %v1261_v48 = vpop.permute.xlu0 %1260 }
 0x10e   : > { %v1339_v26 = vmul.f32 %v1266_v29, %v2584_v18  ;;  %v1338_v9 = vmul.f32 %v1261_v48, %v2545_v8 }
 0x10f   : > { %v1421_v31 = vmul.f32 1.442695, %v1420_v37  ;;  %v1388_v0 = vadd.f32 %v1387_v13, %v1386_v52 }
 0x110   : > { %v1389_v62 = vsel %vm1088_vm8, %v1338_v9, 0.0  ;;  %v1391_v27 = vsel %vm1088_vm8, %v1339_v26, 0.0 }
 0x111   : > { %1700 = vpow2.f32 %v1421_v31  ;;  %v1390_v42 = vadd.f32 %v1389_v62, %v1388_v0  ;;  %v1276_v41 = vpop.permute.xlu1 %1275  ;;  %v1271_v4 = vpop.permute.xlu0 %1270  ;;  %v1423_v62 = vmax.f32 %v2792_v39, 0.0 }
 0x112   : > { %v1341_v19 = vmul.f32 %v1276_v41, %v2593_v25  ;;  %v1340_v3 = vmul.f32 %v1271_v4, %v2586_v63 }
 0x113   : > { %v1392_v57 = vadd.f32 %v1391_v27, %v1390_v42 }
 0x114   : > { %v1393_v2 = vsel %vm1088_vm8, %v1340_v3, 0.0  ;;  %v1395_v11 = vsel %vm1088_vm8, %v1341_v19, 0.0 }
 0x115   : > { %v1394_v18 = vadd.f32 %v1393_v2, %v1392_v57  ;;  %v1286_v23 = vpop.permute.xlu1 %1285  ;;  %v1281_v8 = vpop.permute.xlu0 %1280 }
 0x116   : > { %v1343_v44 = vmul.f32 %v1286_v23, %v2644_v14  ;;  %v1342_v32 = vmul.f32 %v1281_v8, %v2621_v33 }
 0x117   : > { %v1396_v54 = vadd.f32 %v1395_v11, %v1394_v18 }
 0x118   : > { %v1397_v24 = vsel %vm1088_vm8, %v1342_v32, 0.0  ;;  %v1399_v63 = vsel %vm1088_vm8, %v1343_v44, 0.0 }
 0x119   : > { %v1398_v15 = vadd.f32 %v1397_v24, %v1396_v54  ;;  %v1296_v43 = vpop.permute.xlu1 %1295  ;;  %v1291_v25 = vpop.permute.xlu0 %1290 }
 0x11a   : > { %v1345_v5 = vmul.f32 %v1296_v43, %v2693_v40  ;;  %v1344_v17 = vmul.f32 %v1291_v25, %v2688_v16  ;;  %v1469_v43 = vstv %s1465_s21 }
 0x11b   : > { %v1400_v10 = vadd.f32 %v1399_v63, %v1398_v15  ;;  %v1466_v63 = vld [vmem:[#allocation2] sm:$0x1] }
 0x11c   : > { %v1401_v51 = vsel %vm1088_vm8, %v1344_v17, 0.0  ;;  %v1403_v33 = vsel %vm1088_vm8, %v1345_v5, 0.0 }
 0x11d   : > { %v1402_v12 = vadd.f32 %v1401_v51, %v1400_v10  ;;  %v1306_v30 = vpop.permute.xlu1 %1305  ;;  %v1301_v14 = vpop.permute.xlu0 %1300 }
 0x11e   : > { %v1701_v50 = vpop.eup %1700  ;;  %v1347_v53 = vmul.f32 %v1306_v30, %v2718_v49  ;;  %v1346_v34 = vmul.f32 %v1301_v14, %v2709_v59 }
 0x11f   : > { %v1404_v20 = vadd.f32 %v1403_v33, %v1402_v12  ;;  %v1426_v58 = vadd.f32 1.0, %v1701_v50  ;;  %v1429_v61 = vmul.f32 -0.5, %v1701_v50  ;;  %v1432_v26 = vand.u32 2147483647, %v1701_v50 }
 0x120   : > { %v1405_v60 = vsel %vm1088_vm8, %v1346_v34, 0.0  ;;  %v1407_v55 = vsel %vm1088_vm8, %v1347_v53, 0.0 }
 0x121   : > { %v1406_v40 = vadd.f32 %v1405_v60, %v1404_v20  ;;  %v1316_v28 = vpop.permute.xlu1 %1315  ;;  %v1311_v16 = vpop.permute.xlu0 %1310  ;;  %1702 = vrcp.f32 %v1426_v58  ;;  %v1430_v48 = vadd.f32 1.0, %v1429_v61  ;;  %vm1433_vm7 = vcmp.lt.f32.partialorder %v1432_v26, 0.0004427343 }
 0x122   : > { %v1349_v35 = vmul.f32 %v1316_v28, %v2768_v36  ;;  %v1348_v22 = vmul.f32 %v1311_v16, %v2759_v45  ;;  %1704 = vlog2.f32 %v1426_v58 }
 0x123   : > { %v1408_v47 = vadd.f32 %v1407_v55, %v1406_v40  ;;  %v1431_v41 = vmul.f32 %v1701_v50, %v1430_v48 }
 0x124   : > { %v1409_v38 = vsel %vm1088_vm8, %v1348_v22, 0.0  ;;  %v1411_v59 = vsel %vm1088_vm8, %v1349_v35, 0.0 }
 0x125   : > { %v1410_v49 = vadd.f32 %v1409_v38, %v1408_v47 }
 0x127   : > { %v1412_v46 = vadd.f32 %v1411_v59, %v1410_v49 }
 0x129   : > { %v1413_v7 = vrot.slane %v1412_v46, 4 }
 0x12b   : > { %v1414_v6 = vadd.f32 %v1413_v7, %v1412_v46 }
 0x12d   : > { %v1415_v1 = vrot.slane %v1414_v6, 2 }
 0x12e   : > { %v1703_v56 = vpop.eup %1702 }
 0x12f   : > { %v1445_v21 = vmul.f32 %v1703_v56, %v1701_v50  ;;  %v1416_v37 = vadd.f32 %v1415_v1, %v1414_v6  ;;  %v1705_v36 = vpop.eup %1704 }
 0x130   : > { %v1428_v9 = vmul.f32 0.6931472, %v1705_v36 }
 0x131   : > { %v1446_v52 = vsel %vm1444_vm6, %v1703_v56, %v1445_v21  ;;  %v1417_v45 = vrot.slane %v1416_v37, 1 }
 0x132   : > { %v1452_v29 = vsel %vm1088_vm8, %v1446_v52, 0.0  ;;  %v1434_v19 = vsel %vm1433_vm7, %v1431_v41, %v1428_v9 }
 0x133   : > { %1453 = vadd.xlane.f32.xlu0 %v1452_v29  ;;  %v1418_v13 = vadd.f32 %v1417_v45, %v1416_v37 }
 0x135   : > { %v1455_v31 = vsel %vm1088_vm8, %v1418_v13, 0.0  ;;  %v1447_v0 = vmul.f32 %v1446_v52, %v1418_v13  ;;  %v1424_v42 = vmul.f32 %v1418_v13, %v2792_v39 }
 0x136   : > { %1456 = vadd.xlane.f32.xlu1 %v1455_v31 }
 0x137   : > { %v1448_v4 = vsel %vm1088_vm8, %v1447_v0, 0.0  ;;  %v1425_v27 = vsub.f32 %v1423_v62, %v1424_v42 }
 0x138   : > { %1449 = vadd.xlane.f32.xlu0 %v1448_v4 }
 0x139   : > { %v1435_v3 = vadd.f32 %v1434_v19, %v1425_v27 }
 0x13b   : > { %v1436_v57 = vsel %vm1088_vm8, %v1435_v3, 0.0  ;;  %vm1472_vm8 = vcmask 8192  }
 0x13c   : > { %1437 = vadd.xlane.f32.xlu0 %v1436_v57 }
 0x1bc   : > { %v1454_v2 = vpop.xlane.xlu0 %1453 }
 0x1bf   : > { %v1457_v18 = vpop.xlane.xlu1 %1456 }
 0x1c0   : > { %v1458_v23 = vadd.f32 %v1457_v18, %v1454_v2 }
 0x1c1   : > { %v1450_v11 = vpop.xlane.xlu0 %1449 }
 0x1c2   : > { %v1460_v8 = vadd.f32 1.0, %v1458_v23  ;;  %v1451_v39 = vmul.f32 2.0, %v1450_v11 }
 0x1c4   : > { %1706 = vrcp.f32 %v1460_v8  ;;  %v1459_v44 = vadd.f32 1.0, %v1451_v39 }
 0x1c5   : > { %v1438_v54 = vpop.xlane.xlu0 %1437 }
 0x1c6   : > { %v1440_v25 = vmul.f32 0.03125, %v1438_v54 }
 0x1d1   : > { %v1707_v32 = vpop.eup %1706 }
 0x1d2   : > { %v1462_v24 = vmul.f32 %v1707_v32, %v1459_v44 }
 0x1d4   : > { %v1463_v15 = vsub.f32 1.0, %v1462_v24 }
 0x1d6   : > { %v1468_v5 = vsel %vm1467_vm9, %v1440_v25, %v1463_v15 }
 0x1d7   : > { %v1470_v17 = vmul.f32 %v1469_v43, %v1468_v5  ;;  %1477 = sbr.rel (%p1619_p1) target bundleno = 484 (0x1e4), region = 44 }
 0x1d9   : > { %v1471_v10 = vadd.f32 %v1470_v17, %v1466_v63 }
 0x1db   : > { %1473 = vst.msk [vmem:[#allocation2] sm:$0x1] %vm1472_vm8, %v1471_v10 }
 0x1e2   : > { %v1478_v51 = vld [vmem:[#allocation2] sm:$0x1] }
 0x1e3   : > { %1479 = vst.msk [vmem:[%s1928_s20] sm:$0x1] %vm1472_vm8, %v1478_v51 }
 0x1e4 PF: > { %s1620_s25 = sshll.u32 %s1788_s19, 4  ;;  %s1493_s10 = sshll.u32 %s1928_s20, 4  ;;  %s1494_s10 = int_to_ptr.vmem [resolvable:$true] %s1493_s10 }
 0x1e5   : > { %s1491_s8 = scalar_lea.hbm %s2885_s4, %s1620_s25  ;;  %s2908_s11 = sand.u32 1, %s1776_s16  }
 0x1e6   : > { %s1481_s12 = scalar_lea.sflag [#allocation4], %s2908_s11  ;;  %s1708_s13 = scalar_lea.vmem %s1494_s10, 16 }
 0x1e7   : > { %p1709_p2 = scmp.ne.s32.totalorder %s1494_s10, %s1708_s13  ;;  %s1804_s18 = smov [#allocation3]  }
 0x1e8   : > { %s1712_s14 = sshll.u32 %s1804_s18, 4  ;;  %s1713_s14 = int_to_ptr.vmem [resolvable:$false] %s1712_s14 }
 0x1e9   : > { %p1710_p4 = pnand %p1709_p2, %p1879_p3  ;;  %s1714_s23 = scalar_lea.vmem %s1713_s14, 32 }
 0x1ea   : > { %p1715_p6 = scmp.lt.s32.totalorder %s1494_s10, %s1713_s14  ;;  %p1716_p7 = scmp.lt.s32.totalorder %s1714_s23, %s1708_s13 }
 0x1eb   : > { %p1711_p5 = pneg %p1710_p4 }
 0x1ec   : > { %p1717_p8 = por %p1716_p7, %p1715_p6 }
 0x1ee   : > { %p1718_p10 = pnand %p1717_p8, %p1711_p5 }
 0x1f0   : > { %1721 = shalt.err (!%p1718_p10)
}
 0x1f1   : > { %s1722_s19 = scalar_lea.hbm %s1491_s8, 16  ;;  %s1726_s29 = scalar_lea.hbm %s2885_s4, 32 }
 0x1f2   : > { %p1723_p11 = scmp.ne.s32.totalorder %s1491_s8, %s1722_s19  ;;  %p1727_p0 = scmp.lt.s32.totalorder %s1491_s8, %s2885_s4 }
 0x1f3   : > { %p1728_p1 = scmp.lt.s32.totalorder %s1726_s29, %s1722_s19 }
 0x1f4   : > { %p1724_p12 = pnand %p1723_p11, %p1879_p3 }
 0x1f5   : > { %p1729_p2 = por %p1728_p1, %p1727_p0 }
 0x1f6   : > { %p1725_p13 = pneg %p1724_p12 }
 0x1f8   : > { %p1730_p4 = pnand %p1729_p2, %p1725_p13 }
 0x1fa   : > { %1733 = shalt.err (!%p1730_p4)
}
 0x1fb   : > { %1625 = dma.vmem_to_hbm [thread:$0]  (%p1879_p3), %s1494_s10, 16, %s1491_s8, %s1481_s12  }
 0x1fc PF: > { %p1631_p5 = scmp.ge.s32.totalorder %s1800_s22, 2  ;;  %s1505_s9 = sand.u32 1, %s1772_s15  }
 0x1fd   : > { %s1506_s21 = scalar_lea.sflag [#allocation4], %s1505_s9 }
 0x1fe   : > { %p1628_p6 = pnand %p1631_p5, %p1889_p9 }
 0x200   : > { %p1629_p7 = pneg %p1628_p6 }
 0x202   : > { %1767 = dma.done.wait (%p1629_p7), %s1506_s21, 16  }
 0x203   : > { %1769 = vsyncadd (%p1629_p7), %s1506_s21, 4294967280  ;;  %s17_s22 = sadd.s32 1, %s1800_s22   ;;  %s2909_s18 = sld [smem:[#allocation6_spill]] }
 0x204   : > { %p14_p8 = scmp.ge.s32.totalorder %s17_s22, 8   ;;  %s2910_s19 = sld [smem:[#allocation7_spill]] }
 0x205   : > { %s2911_s20 = sld [smem:[#allocation8_spill]]  ;;  %s2913_s15 = smov %s1776_s16 }
 0x206   : > { %s2912_s21 = sld [smem:[#allocation9_spill]]  ;;  %s2914_s16 = smov %s1780_s17 }
 0x207   : > { %s2915_s17 = smov %s1897_s5  ;;  %16 = sbr.rel (!%p14_p8) target bundleno = 5 (0x5), region = 88 }
 0x20c   :  { %1510 = vsyncpa [#allocation4], 1 }
 0x20d   :  { %1512 = vsyncpa [#allocation4 + $0x1], 1 }

</bundles_post_ra>
